<compile_context>
chip_gen: v6e
topology: v6e:2x2x1
jax: 0.10.0
libtpu: 0.0.40
codegen_flags: <defaults>
</compile_context>

<pallas_src>
import functools

import jax
import jax.numpy as jnp
from jax.experimental import pallas as pl
from jax.experimental.pallas import tpu as pltpu


# ----------------------------- config ---------------------------------------
class Cfg:
    vocab_size = 64
    hidden_size = 32
    intermediate_size = 64
    num_attention_heads = 4
    num_key_value_heads = 2
    head_dim = 8                      # hidden_size // num_attention_heads
    num_hidden_layers = 2
    rope_theta = 10000.0
    rms_norm_eps = 1e-6


_MASK_MIN = float(jnp.finfo(jnp.bfloat16).min)   # same fill value as HF reference


# ----------------------------- kernel ----------------------------------------
def _rmsnorm_f32(xf, eps):
    var = jnp.mean(xf * xf, axis=-1, keepdims=True)
    return xf * jax.lax.rsqrt(var + eps)


def _qwen2_model_kernel(x_ref, ln1_ref, wqkv_ref, bqkv_ref, wo_ref, ln2_ref,
                        wg_ref, wu_ref, wd_ref, fnorm_ref, cos_ref, sin_ref,
                        rot_ref, o_ref, ctx_scr,
                        *, eps, scaling, nH, nKV, D, L):
    """One grid step = one batch element; all layers run inside the kernel."""
    S = x_ref.shape[1]
    Nq = nH * D
    Nkv = nKV * D
    n_rep = nH // nKV

    # Additive causal mask built in-kernel (no HBM input / DMA for it).
    row = jax.lax.broadcasted_iota(jnp.int32, (S, S), 0)
    col = jax.lax.broadcasted_iota(jnp.int32, (S, S), 1)
    mask = jnp.where(col > row, jnp.float32(_MASK_MIN), jnp.float32(0.0))

    cos = cos_ref[...]                     # (S, Nq+Nkv) bf16, head-tiled
    sin = sin_ref[...]                     # (S, Nq+Nkv) bf16, head-tiled
    rot = rot_ref[...]                     # (Nq+Nkv, Nq+Nkv) block-diag rotate_half

    x = x_ref[0]                           # (S, H) bf16 residual stream (stays in vregs)

    for l in range(L):                     # trace-time unroll over layers
        # ---------------- fused RMSNorm + QKV projection (+bias) -------------
        normed = (_rmsnorm_f32(x.astype(jnp.float32), eps).astype(jnp.bfloat16)
                  * ln1_ref[l])
        qkv = jnp.dot(normed, wqkv_ref[l], preferred_element_type=jnp.float32)
        qkv = (qkv + bqkv_ref[l].astype(jnp.float32)).astype(jnp.bfloat16)

        # ---------------- slab-wide RoPE on [Q | K] ---------------------------
        # rotate_half for all (nH + nKV) heads at once via one MXU matmul
        # against a block-diagonal +-1 matrix (exact), then cos/sin multiply.
        qk = qkv[:, :Nq + Nkv]                                   # (S, Nq+Nkv)
        v = qkv[:, Nq + Nkv:]                                    # (S, Nkv)
        qk_rot = jnp.dot(qk, rot,
                         preferred_element_type=jnp.float32).astype(jnp.bfloat16)
        qk = qk * cos + qk_rot * sin                             # roped Q|K, bf16

        # ---------------- attention (GQA: kv head shared by its group) --------
        for h in range(nH):
            g = h // n_rep
            q_h = qk[:, h * D:(h + 1) * D]                       # (S, D)
            k_g = qk[:, Nq + g * D: Nq + (g + 1) * D]            # (S, D)
            v_g = v[:, g * D:(g + 1) * D]                        # (S, D)
            s = jax.lax.dot_general(q_h, k_g, (((1,), (1,)), ((), ())),
                                    preferred_element_type=jnp.float32)
            s = s * scaling + mask
            s = s - jnp.max(s, axis=-1, keepdims=True)
            p = jnp.exp(s)
            p = p * pl.reciprocal(jnp.sum(p, axis=-1, keepdims=True), approx=False)
            # write head context straight into its lane slice of the VMEM slab
            ctx_scr[:, h * D:(h + 1) * D] = jnp.dot(
                p.astype(jnp.bfloat16), v_g, preferred_element_type=jnp.float32)

        attn = jnp.dot(ctx_scr[...].astype(jnp.bfloat16), wo_ref[l],
                       preferred_element_type=jnp.float32).astype(jnp.bfloat16)
        x = x + attn                                             # residual add (bf16)

        # ---------------- fused RMSNorm + gated MLP ---------------------------
        normed2 = (_rmsnorm_f32(x.astype(jnp.float32), eps).astype(jnp.bfloat16)
                   * ln2_ref[l])
        gate = jnp.dot(normed2, wg_ref[l], preferred_element_type=jnp.float32)
        up = jnp.dot(normed2, wu_ref[l], preferred_element_type=jnp.float32)
        hmid = (gate * jax.nn.sigmoid(gate) * up).astype(jnp.bfloat16)
        down = jnp.dot(hmid, wd_ref[l],
                       preferred_element_type=jnp.float32).astype(jnp.bfloat16)
        x = x + down                                             # residual add (bf16)

    # ---------------- final RMSNorm -------------------------------------------
    o_ref[0] = (_rmsnorm_f32(x.astype(jnp.float32), eps).astype(jnp.bfloat16)
                * fnorm_ref[...])


# ----------------------------- parameters ------------------------------------
def init_params(key, cfg):
    H, I, L = cfg.hidden_size, cfg.intermediate_size, cfg.num_hidden_layers
    nH, nKV, D = cfg.num_attention_heads, cfg.num_key_value_heads, cfg.head_dim
    Nqkv = nH * D + 2 * nKV * D

    keys = jax.random.split(key, 7)

    def dense(k, shape, scale=0.02):
        return (jax.random.normal(k, shape, jnp.float32) * scale).astype(jnp.bfloat16)

    # Per-layer weights stacked along a leading L axis (loaded once into VMEM).
    return {
        "embed": dense(keys[0], (cfg.vocab_size, H)),
        "final_norm": jnp.ones((1, H), jnp.bfloat16),
        "ln1": jnp.ones((L, 1, H), jnp.bfloat16),
        "ln2": jnp.ones((L, 1, H), jnp.bfloat16),
        "w_qkv": dense(keys[1], (L, H, Nqkv)),     # [Wq | Wk | Wv] pre-transposed
        "b_qkv": dense(keys[2], (L, 1, Nqkv)),     # [bq | bk | bv]
        "wo": dense(keys[3], (L, nH * D, H)),      # o_proj (no bias)
        "wg": dense(keys[4], (L, H, I)),
        "wu": dense(keys[5], (L, H, I)),
        "wd": dense(keys[6], (L, I, H)),
    }


# ----------------------------- model forward ---------------------------------
def qwen2_forward(params, input_ids, cfg):
    B, S = input_ids.shape
    H, D, I = cfg.hidden_size, cfg.head_dim, cfg.intermediate_size
    nH, nKV, L = cfg.num_attention_heads, cfg.num_key_value_heads, cfg.num_hidden_layers
    Nq, Nkv = nH * D, nKV * D
    Wqk = Nq + Nkv
    Nqkv = Nq + 2 * Nkv
    scaling = D ** (-0.5)

    # TODO(synk): embedding gather (data-dependent) kept in plain JAX.
    hidden = jnp.take(params["embed"], input_ids, axis=0)           # (B, S, H) bf16

    # Rotary tables (Qwen2RotaryEmbedding), positions = arange(S); tiled per head
    # so RoPE applies slab-wide inside the kernel.
    inv_freq = 1.0 / (cfg.rope_theta ** (jnp.arange(0, D, 2, dtype=jnp.float32) / D))
    pos = jnp.arange(S, dtype=jnp.float32)
    freqs = pos[:, None] * inv_freq[None, :]                         # (S, D/2)
    emb = jnp.concatenate([freqs, freqs], axis=-1)                   # (S, D)
    cos_t = jnp.tile(jnp.cos(emb), (1, nH + nKV)).astype(jnp.bfloat16)   # (S, Wqk)
    sin_t = jnp.tile(jnp.sin(emb), (1, nH + nKV)).astype(jnp.bfloat16)   # (S, Wqk)

    # Block-diagonal rotate_half matrix: per head block [[0, I], [-I, 0]] layout
    # so that (x @ M) == rotate_half(x) exactly (coefficients are +-1).
    half = D // 2
    m = jnp.zeros((D, D), jnp.float32)
    m = m.at[half:, :half].set(-jnp.eye(half, dtype=jnp.float32))
    m = m.at[:half, half:].set(jnp.eye(half, dtype=jnp.float32))
    rot_bd = jnp.kron(jnp.eye(nH + nKV, dtype=jnp.float32), m).astype(jnp.bfloat16)

    kernel = functools.partial(_qwen2_model_kernel, eps=cfg.rms_norm_eps,
                               scaling=scaling, nH=nH, nKV=nKV, D=D, L=L)

    inv = lambda b: (0, 0, 0)          # grid-invariant (weights DMA'd once)
    inv2 = lambda b: (0, 0)

    out = pl.pallas_call(
        kernel,
        out_shape=jax.ShapeDtypeStruct((B, S, H), jnp.bfloat16),
        grid=(B,),
        in_specs=[
            pl.BlockSpec((1, S, H), lambda b: (b, 0, 0)),        # hidden states
            pl.BlockSpec((L, 1, H), inv),                        # ln1 (stacked)
            pl.BlockSpec((L, H, Nqkv), inv),                     # w_qkv
            pl.BlockSpec((L, 1, Nqkv), inv),                     # b_qkv
            pl.BlockSpec((L, Nq, H), inv),                       # wo
            pl.BlockSpec((L, 1, H), inv),                        # ln2
            pl.BlockSpec((L, H, I), inv),                        # wg
            pl.BlockSpec((L, H, I), inv),                        # wu
            pl.BlockSpec((L, I, H), inv),                        # wd
            pl.BlockSpec((1, H), inv2),                          # final norm
            pl.BlockSpec((S, Wqk), inv2),                        # cos (tiled)
            pl.BlockSpec((S, Wqk), inv2),                        # sin (tiled)
            pl.BlockSpec((Wqk, Wqk), inv2),                      # rotate_half matrix
        ],
        out_specs=pl.BlockSpec((1, S, H), lambda b: (b, 0, 0)),
        scratch_shapes=[pltpu.VMEM((S, Nq), jnp.float32)],        # ctx slab
        compiler_params=pltpu.CompilerParams(
            dimension_semantics=("parallel",)),
    )(hidden, params["ln1"], params["w_qkv"], params["b_qkv"], params["wo"],
      params["ln2"], params["wg"], params["wu"], params["wd"],
      params["final_norm"], cos_t, sin_t, rot_bd)
    return out


# ----------------------------- main -------------------------------------------
if __name__ == "__main__":
    cfg = Cfg()
    key = jax.random.PRNGKey(0)
    pkey, ikey = jax.random.split(key)

    params = init_params(pkey, cfg)

    B, S = 2, 8
    input_ids = jax.random.randint(ikey, (B, S), 0, cfg.vocab_size)

    fwd = jax.jit(functools.partial(qwen2_forward, cfg=cfg))
    out = jax.block_until_ready(fwd(params, input_ids))

    assert out.shape == (B, S, cfg.hidden_size)
    assert out.dtype == jnp.bfloat16
    print("KERNEL_OK")
</pallas_src>

<mosaic_0001>
module attributes {stable_mosaic.version = 11 : i64} {
  func.func @_qwen2_model_kernel(%arg0: i32, %arg1: memref<1x8x32xbf16, #tpu.memory_space<vmem>>, %arg2: memref<2x1x32xbf16, #tpu.memory_space<vmem>>, %arg3: memref<2x32x64xbf16, #tpu.memory_space<vmem>>, %arg4: memref<2x1x64xbf16, #tpu.memory_space<vmem>>, %arg5: memref<2x32x32xbf16, #tpu.memory_space<vmem>>, %arg6: memref<2x1x32xbf16, #tpu.memory_space<vmem>>, %arg7: memref<2x32x64xbf16, #tpu.memory_space<vmem>>, %arg8: memref<2x32x64xbf16, #tpu.memory_space<vmem>>, %arg9: memref<2x64x32xbf16, #tpu.memory_space<vmem>>, %arg10: memref<1x32xbf16, #tpu.memory_space<vmem>>, %arg11: memref<8x48xbf16, #tpu.memory_space<vmem>>, %arg12: memref<8x48xbf16, #tpu.memory_space<vmem>>, %arg13: memref<48x48xbf16, #tpu.memory_space<vmem>>, %arg14: memref<1x8x32xbf16, #tpu.memory_space<vmem>>, %arg15: memref<8x32xf32, #tpu.memory_space<vmem>>) attributes {dimension_semantics = [#tpu.dimension_semantics<parallel>], iteration_bounds = array<i64: 2>, scalar_prefetch = 0 : i64, scratch_operands = 1 : i64, tpu.core_type = #tpu.core_type<tc>, window_params = [{transform_indices = @transform_0, window_bounds = array<i64: 1, 8, 32>}, {pipeline_mode = #tpu.pipeline_mode<synchronous>, transform_indices = @transform_1, window_bounds = array<i64: 2, 1, 32>}, {pipeline_mode = #tpu.pipeline_mode<synchronous>, transform_indices = @transform_2, window_bounds = array<i64: 2, 32, 64>}, {pipeline_mode = #tpu.pipeline_mode<synchronous>, transform_indices = @transform_3, window_bounds = array<i64: 2, 1, 64>}, {pipeline_mode = #tpu.pipeline_mode<synchronous>, transform_indices = @transform_4, window_bounds = array<i64: 2, 32, 32>}, {pipeline_mode = #tpu.pipeline_mode<synchronous>, transform_indices = @transform_5, window_bounds = array<i64: 2, 1, 32>}, {pipeline_mode = #tpu.pipeline_mode<synchronous>, transform_indices = @transform_6, window_bounds = array<i64: 2, 32, 64>}, {pipeline_mode = #tpu.pipeline_mode<synchronous>, transform_indices = @transform_7, window_bounds = array<i64: 2, 32, 64>}, {pipeline_mode = #tpu.pipeline_mode<synchronous>, transform_indices = @transform_8, window_bounds = array<i64: 2, 64, 32>}, {pipeline_mode = #tpu.pipeline_mode<synchronous>, transform_indices = @transform_9, window_bounds = array<i64: 1, 32>}, {pipeline_mode = #tpu.pipeline_mode<synchronous>, transform_indices = @transform_10, window_bounds = array<i64: 8, 48>}, {pipeline_mode = #tpu.pipeline_mode<synchronous>, transform_indices = @transform_11, window_bounds = array<i64: 8, 48>}, {pipeline_mode = #tpu.pipeline_mode<synchronous>, transform_indices = @transform_12, window_bounds = array<i64: 48, 48>}, {transform_indices = @transform_13, window_bounds = array<i64: 1, 8, 32>}]} {
    %0 = tpu.iota {dimensions = array<i32: 0>} : vector<8x8xi32>
    %1 = tpu.iota {dimensions = array<i32: 1>} : vector<8x8xi32>
    %2 = arith.cmpi sgt, %1, %0 : vector<8x8xi32>
    %cst = arith.constant -3.38953139E+38 : f32
    %cst_0 = arith.constant 0.000000e+00 : f32
    %3 = vector.broadcast %cst : f32 to vector<8x8xf32>
    %4 = vector.broadcast %cst_0 : f32 to vector<8x8xf32>
    %5 = arith.select %2, %3, %4 : vector<8x8xi1>, vector<8x8xf32>
    %c0 = arith.constant 0 : index
    %c0_1 = arith.constant 0 : index
    %6 = vector.load %arg11[%c0, %c0_1] : memref<8x48xbf16, #tpu.memory_space<vmem>>, vector<8x48xbf16>
    %c0_2 = arith.constant 0 : index
    %c0_3 = arith.constant 0 : index
    %7 = vector.load %arg12[%c0_2, %c0_3] : memref<8x48xbf16, #tpu.memory_space<vmem>>, vector<8x48xbf16>
    %c0_4 = arith.constant 0 : index
    %c0_5 = arith.constant 0 : index
    %8 = vector.load %arg13[%c0_4, %c0_5] : memref<48x48xbf16, #tpu.memory_space<vmem>>, vector<48x48xbf16>
    %c0_6 = arith.constant 0 : index
    %c0_7 = arith.constant 0 : index
    %c0_8 = arith.constant 0 : index
    %9 = vector.load %arg1[%c0_6, %c0_7, %c0_8] : memref<1x8x32xbf16, #tpu.memory_space<vmem>>, vector<1x8x32xbf16>
    %10 = vector.shape_cast %9 : vector<1x8x32xbf16> to vector<8x32xbf16>
    %11 = arith.extf %10 : vector<8x32xbf16> to vector<8x32xf32>
    %12 = arith.mulf %11, %11 : vector<8x32xf32>
    %cst_9 = arith.constant dense<0.000000e+00> : vector<8xf32>
    %13 = vector.multi_reduction <add>, %12, %cst_9 [1] : vector<8x32xf32> to vector<8xf32>
    %14 = vector.shape_cast %13 : vector<8xf32> to vector<8x1xf32>
    %cst_10 = arith.constant 3.200000e+01 : f32
    %15 = vector.broadcast %cst_10 : f32 to vector<8x1xf32>
    %16 = arith.divf %14, %15 : vector<8x1xf32>
    %cst_11 = arith.constant 9.99999997E-7 : f32
    %17 = vector.broadcast %cst_11 : f32 to vector<8x1xf32>
    %18 = arith.addf %16, %17 : vector<8x1xf32>
    %19 = math.rsqrt %18 : vector<8x1xf32>
    %20 = vector.broadcast %19 : vector<8x1xf32> to vector<8x32xf32>
    %21 = arith.mulf %11, %20 : vector<8x32xf32>
    %22 = arith.truncf %21 : vector<8x32xf32> to vector<8x32xbf16>
    %c0_12 = arith.constant 0 : index
    %c0_13 = arith.constant 0 : index
    %c0_14 = arith.constant 0 : index
    %23 = vector.load %arg2[%c0_12, %c0_13, %c0_14] : memref<2x1x32xbf16, #tpu.memory_space<vmem>>, vector<1x1x32xbf16>
    %24 = vector.shape_cast %23 : vector<1x1x32xbf16> to vector<1x32xbf16>
    %25 = vector.broadcast %24 : vector<1x32xbf16> to vector<8x32xbf16>
    %26 = arith.mulf %22, %25 : vector<8x32xbf16>
    %c0_15 = arith.constant 0 : index
    %c0_16 = arith.constant 0 : index
    %c0_17 = arith.constant 0 : index
    %27 = vector.load %arg3[%c0_15, %c0_16, %c0_17] : memref<2x32x64xbf16, #tpu.memory_space<vmem>>, vector<1x32x64xbf16>
    %28 = vector.shape_cast %27 : vector<1x32x64xbf16> to vector<32x64xbf16>
    %cst_18 = arith.constant dense<0.000000e+00> : vector<8x64xf32>
    %29 = tpu.matmul %26, %28, %cst_18 {dimension_numbers = #tpu.dot_dimension_numbers<[1], [0], [0], [1], [0, 0, 1, 1], [], []>} : vector<8x32xbf16>, vector<32x64xbf16>, vector<8x64xf32> -> vector<8x64xf32>
    %c0_19 = arith.constant 0 : index
    %c0_20 = arith.constant 0 : index
    %c0_21 = arith.constant 0 : index
    %30 = vector.load %arg4[%c0_19, %c0_20, %c0_21] : memref<2x1x64xbf16, #tpu.memory_space<vmem>>, vector<1x1x64xbf16>
    %31 = vector.shape_cast %30 : vector<1x1x64xbf16> to vector<1x64xbf16>
    %32 = arith.extf %31 : vector<1x64xbf16> to vector<1x64xf32>
    %33 = vector.broadcast %32 : vector<1x64xf32> to vector<8x64xf32>
    %34 = arith.addf %29, %33 : vector<8x64xf32>
    %35 = arith.truncf %34 : vector<8x64xf32> to vector<8x64xbf16>
    %36 = vector.extract_strided_slice %35 {offsets = [0, 0], sizes = [8, 48], strides = [1, 1]} : vector<8x64xbf16> to vector<8x48xbf16>
    %37 = vector.extract_strided_slice %35 {offsets = [0, 48], sizes = [8, 16], strides = [1, 1]} : vector<8x64xbf16> to vector<8x16xbf16>
    %cst_22 = arith.constant dense<0.000000e+00> : vector<8x48xf32>
    %38 = tpu.matmul %36, %8, %cst_22 {dimension_numbers = #tpu.dot_dimension_numbers<[1], [0], [0], [1], [0, 0, 1, 1], [], []>} : vector<8x48xbf16>, vector<48x48xbf16>, vector<8x48xf32> -> vector<8x48xf32>
    %39 = arith.truncf %38 : vector<8x48xf32> to vector<8x48xbf16>
    %40 = arith.mulf %36, %6 : vector<8x48xbf16>
    %41 = arith.mulf %39, %7 : vector<8x48xbf16>
    %42 = arith.addf %40, %41 : vector<8x48xbf16>
    %43 = vector.extract_strided_slice %42 {offsets = [0, 0], sizes = [8, 8], strides = [1, 1]} : vector<8x48xbf16> to vector<8x8xbf16>
    %44 = vector.extract_strided_slice %42 {offsets = [0, 32], sizes = [8, 8], strides = [1, 1]} : vector<8x48xbf16> to vector<8x8xbf16>
    %45 = vector.extract_strided_slice %37 {offsets = [0, 0], sizes = [8, 8], strides = [1, 1]} : vector<8x16xbf16> to vector<8x8xbf16>
    %cst_23 = arith.constant dense<0.000000e+00> : vector<8x8xf32>
    %46 = tpu.matmul %43, %44, %cst_23 {dimension_numbers = #tpu.dot_dimension_numbers<[1], [1], [0], [0], [0, 0, 1, 0], [], []>} : vector<8x8xbf16>, vector<8x8xbf16>, vector<8x8xf32> -> vector<8x8xf32>
    %cst_24 = arith.constant 0.353553385 : f32
    %47 = vector.broadcast %cst_24 : f32 to vector<8x8xf32>
    %48 = arith.mulf %46, %47 : vector<8x8xf32>
    %49 = arith.addf %48, %5 : vector<8x8xf32>
    %cst_25 = arith.constant dense<0xFF800000> : vector<8xf32>
    %50 = vector.multi_reduction <maximumf>, %49, %cst_25 [1] : vector<8x8xf32> to vector<8xf32>
    %51 = vector.shape_cast %50 : vector<8xf32> to vector<8x1xf32>
    %52 = vector.broadcast %51 : vector<8x1xf32> to vector<8x8xf32>
    %53 = arith.subf %49, %52 : vector<8x8xf32>
    %54 = math.exp %53 : vector<8x8xf32>
    %cst_26 = arith.constant dense<0.000000e+00> : vector<8xf32>
    %55 = vector.multi_reduction <add>, %54, %cst_26 [1] : vector<8x8xf32> to vector<8xf32>
    %56 = vector.shape_cast %55 : vector<8xf32> to vector<8x1xf32>
    %57 = tpu.reciprocal %56 : vector<8x1xf32> -> vector<8x1xf32>
    %58 = vector.broadcast %57 : vector<8x1xf32> to vector<8x8xf32>
    %59 = arith.mulf %54, %58 : vector<8x8xf32>
    %60 = arith.truncf %59 : vector<8x8xf32> to vector<8x8xbf16>
    %cst_27 = arith.constant dense<0.000000e+00> : vector<8x8xf32>
    %61 = tpu.matmul %60, %45, %cst_27 {dimension_numbers = #tpu.dot_dimension_numbers<[1], [0], [0], [1], [0, 0, 1, 1], [], []>} : vector<8x8xbf16>, vector<8x8xbf16>, vector<8x8xf32> -> vector<8x8xf32>
    %c0_28 = arith.constant 0 : index
    %c0_29 = arith.constant 0 : index
    %62 = vector.load %arg15[%c0_28, %c0_29] : memref<8x32xf32, #tpu.memory_space<vmem>>, vector<8x8xf32>
    tpu.vector_store %arg15[%c0_28, %c0_29], %61 {strides = array<i32>} : memref<8x32xf32, #tpu.memory_space<vmem>>, vector<8x8xf32>,
    %63 = vector.extract_strided_slice %42 {offsets = [0, 8], sizes = [8, 8], strides = [1, 1]} : vector<8x48xbf16> to vector<8x8xbf16>
    %64 = vector.extract_strided_slice %42 {offsets = [0, 32], sizes = [8, 8], strides = [1, 1]} : vector<8x48xbf16> to vector<8x8xbf16>
    %65 = vector.extract_strided_slice %37 {offsets = [0, 0], sizes = [8, 8], strides = [1, 1]} : vector<8x16xbf16> to vector<8x8xbf16>
    %cst_30 = arith.constant dense<0.000000e+00> : vector<8x8xf32>
    %66 = tpu.matmul %63, %64, %cst_30 {dimension_numbers = #tpu.dot_dimension_numbers<[1], [1], [0], [0], [0, 0, 1, 0], [], []>} : vector<8x8xbf16>, vector<8x8xbf16>, vector<8x8xf32> -> vector<8x8xf32>
    %cst_31 = arith.constant 0.353553385 : f32
    %67 = vector.broadcast %cst_31 : f32 to vector<8x8xf32>
    %68 = arith.mulf %66, %67 : vector<8x8xf32>
    %69 = arith.addf %68, %5 : vector<8x8xf32>
    %cst_32 = arith.constant dense<0xFF800000> : vector<8xf32>
    %70 = vector.multi_reduction <maximumf>, %69, %cst_32 [1] : vector<8x8xf32> to vector<8xf32>
    %71 = vector.shape_cast %70 : vector<8xf32> to vector<8x1xf32>
    %72 = vector.broadcast %71 : vector<8x1xf32> to vector<8x8xf32>
    %73 = arith.subf %69, %72 : vector<8x8xf32>
    %74 = math.exp %73 : vector<8x8xf32>
    %cst_33 = arith.constant dense<0.000000e+00> : vector<8xf32>
    %75 = vector.multi_reduction <add>, %74, %cst_33 [1] : vector<8x8xf32> to vector<8xf32>
    %76 = vector.shape_cast %75 : vector<8xf32> to vector<8x1xf32>
    %77 = tpu.reciprocal %76 : vector<8x1xf32> -> vector<8x1xf32>
    %78 = vector.broadcast %77 : vector<8x1xf32> to vector<8x8xf32>
    %79 = arith.mulf %74, %78 : vector<8x8xf32>
    %80 = arith.truncf %79 : vector<8x8xf32> to vector<8x8xbf16>
    %cst_34 = arith.constant dense<0.000000e+00> : vector<8x8xf32>
    %81 = tpu.matmul %80, %65, %cst_34 {dimension_numbers = #tpu.dot_dimension_numbers<[1], [0], [0], [1], [0, 0, 1, 1], [], []>} : vector<8x8xbf16>, vector<8x8xbf16>, vector<8x8xf32> -> vector<8x8xf32>
    %c0_35 = arith.constant 0 : index
    %c8 = arith.constant 8 : index
    %82 = vector.load %arg15[%c0_35, %c8] : memref<8x32xf32, #tpu.memory_space<vmem>>, vector<8x8xf32>
    tpu.vector_store %arg15[%c0_35, %c8], %81 {strides = array<i32>} : memref<8x32xf32, #tpu.memory_space<vmem>>, vector<8x8xf32>,
    %83 = vector.extract_strided_slice %42 {offsets = [0, 16], sizes = [8, 8], strides = [1, 1]} : vector<8x48xbf16> to vector<8x8xbf16>
    %84 = vector.extract_strided_slice %42 {offsets = [0, 40], sizes = [8, 8], strides = [1, 1]} : vector<8x48xbf16> to vector<8x8xbf16>
    %85 = vector.extract_strided_slice %37 {offsets = [0, 8], sizes = [8, 8], strides = [1, 1]} : vector<8x16xbf16> to vector<8x8xbf16>
    %cst_36 = arith.constant dense<0.000000e+00> : vector<8x8xf32>
    %86 = tpu.matmul %83, %84, %cst_36 {dimension_numbers = #tpu.dot_dimension_numbers<[1], [1], [0], [0], [0, 0, 1, 0], [], []>} : vector<8x8xbf16>, vector<8x8xbf16>, vector<8x8xf32> -> vector<8x8xf32>
    %cst_37 = arith.constant 0.353553385 : f32
    %87 = vector.broadcast %cst_37 : f32 to vector<8x8xf32>
    %88 = arith.mulf %86, %87 : vector<8x8xf32>
    %89 = arith.addf %88, %5 : vector<8x8xf32>
    %cst_38 = arith.constant dense<0xFF800000> : vector<8xf32>
    %90 = vector.multi_reduction <maximumf>, %89, %cst_38 [1] : vector<8x8xf32> to vector<8xf32>
    %91 = vector.shape_cast %90 : vector<8xf32> to vector<8x1xf32>
    %92 = vector.broadcast %91 : vector<8x1xf32> to vector<8x8xf32>
    %93 = arith.subf %89, %92 : vector<8x8xf32>
    %94 = math.exp %93 : vector<8x8xf32>
    %cst_39 = arith.constant dense<0.000000e+00> : vector<8xf32>
    %95 = vector.multi_reduction <add>, %94, %cst_39 [1] : vector<8x8xf32> to vector<8xf32>
    %96 = vector.shape_cast %95 : vector<8xf32> to vector<8x1xf32>
    %97 = tpu.reciprocal %96 : vector<8x1xf32> -> vector<8x1xf32>
    %98 = vector.broadcast %97 : vector<8x1xf32> to vector<8x8xf32>
    %99 = arith.mulf %94, %98 : vector<8x8xf32>
    %100 = arith.truncf %99 : vector<8x8xf32> to vector<8x8xbf16>
    %cst_40 = arith.constant dense<0.000000e+00> : vector<8x8xf32>
    %101 = tpu.matmul %100, %85, %cst_40 {dimension_numbers = #tpu.dot_dimension_numbers<[1], [0], [0], [1], [0, 0, 1, 1], [], []>} : vector<8x8xbf16>, vector<8x8xbf16>, vector<8x8xf32> -> vector<8x8xf32>
    %c0_41 = arith.constant 0 : index
    %c16 = arith.constant 16 : index
    %102 = vector.load %arg15[%c0_41, %c16] : memref<8x32xf32, #tpu.memory_space<vmem>>, vector<8x8xf32>
    tpu.vector_store %arg15[%c0_41, %c16], %101 {strides = array<i32>} : memref<8x32xf32, #tpu.memory_space<vmem>>, vector<8x8xf32>,
    %103 = vector.extract_strided_slice %42 {offsets = [0, 24], sizes = [8, 8], strides = [1, 1]} : vector<8x48xbf16> to vector<8x8xbf16>
    %104 = vector.extract_strided_slice %42 {offsets = [0, 40], sizes = [8, 8], strides = [1, 1]} : vector<8x48xbf16> to vector<8x8xbf16>
    %105 = vector.extract_strided_slice %37 {offsets = [0, 8], sizes = [8, 8], strides = [1, 1]} : vector<8x16xbf16> to vector<8x8xbf16>
    %cst_42 = arith.constant dense<0.000000e+00> : vector<8x8xf32>
    %106 = tpu.matmul %103, %104, %cst_42 {dimension_numbers = #tpu.dot_dimension_numbers<[1], [1], [0], [0], [0, 0, 1, 0], [], []>} : vector<8x8xbf16>, vector<8x8xbf16>, vector<8x8xf32> -> vector<8x8xf32>
    %cst_43 = arith.constant 0.353553385 : f32
    %107 = vector.broadcast %cst_43 : f32 to vector<8x8xf32>
    %108 = arith.mulf %106, %107 : vector<8x8xf32>
    %109 = arith.addf %108, %5 : vector<8x8xf32>
    %cst_44 = arith.constant dense<0xFF800000> : vector<8xf32>
    %110 = vector.multi_reduction <maximumf>, %109, %cst_44 [1] : vector<8x8xf32> to vector<8xf32>
    %111 = vector.shape_cast %110 : vector<8xf32> to vector<8x1xf32>
    %112 = vector.broadcast %111 : vector<8x1xf32> to vector<8x8xf32>
    %113 = arith.subf %109, %112 : vector<8x8xf32>
    %114 = math.exp %113 : vector<8x8xf32>
    %cst_45 = arith.constant dense<0.000000e+00> : vector<8xf32>
    %115 = vector.multi_reduction <add>, %114, %cst_45 [1] : vector<8x8xf32> to vector<8xf32>
    %116 = vector.shape_cast %115 : vector<8xf32> to vector<8x1xf32>
    %117 = tpu.reciprocal %116 : vector<8x1xf32> -> vector<8x1xf32>
    %118 = vector.broadcast %117 : vector<8x1xf32> to vector<8x8xf32>
    %119 = arith.mulf %114, %118 : vector<8x8xf32>
    %120 = arith.truncf %119 : vector<8x8xf32> to vector<8x8xbf16>
    %cst_46 = arith.constant dense<0.000000e+00> : vector<8x8xf32>
    %121 = tpu.matmul %120, %105, %cst_46 {dimension_numbers = #tpu.dot_dimension_numbers<[1], [0], [0], [1], [0, 0, 1, 1], [], []>} : vector<8x8xbf16>, vector<8x8xbf16>, vector<8x8xf32> -> vector<8x8xf32>
    %c0_47 = arith.constant 0 : index
    %c24 = arith.constant 24 : index
    %122 = vector.load %arg15[%c0_47, %c24] : memref<8x32xf32, #tpu.memory_space<vmem>>, vector<8x8xf32>
    tpu.vector_store %arg15[%c0_47, %c24], %121 {strides = array<i32>} : memref<8x32xf32, #tpu.memory_space<vmem>>, vector<8x8xf32>,
    %c0_48 = arith.constant 0 : index
    %c0_49 = arith.constant 0 : index
    %123 = vector.load %arg15[%c0_48, %c0_49] : memref<8x32xf32, #tpu.memory_space<vmem>>, vector<8x32xf32>
    %124 = arith.truncf %123 : vector<8x32xf32> to vector<8x32xbf16>
    %c0_50 = arith.constant 0 : index
    %c0_51 = arith.constant 0 : index
    %c0_52 = arith.constant 0 : index
    %125 = vector.load %arg5[%c0_50, %c0_51, %c0_52] : memref<2x32x32xbf16, #tpu.memory_space<vmem>>, vector<1x32x32xbf16>
    %126 = vector.shape_cast %125 : vector<1x32x32xbf16> to vector<32x32xbf16>
    %cst_53 = arith.constant dense<0.000000e+00> : vector<8x32xf32>
    %127 = tpu.matmul %124, %126, %cst_53 {dimension_numbers = #tpu.dot_dimension_numbers<[1], [0], [0], [1], [0, 0, 1, 1], [], []>} : vector<8x32xbf16>, vector<32x32xbf16>, vector<8x32xf32> -> vector<8x32xf32>
    %128 = arith.truncf %127 : vector<8x32xf32> to vector<8x32xbf16>
    %129 = arith.addf %10, %128 : vector<8x32xbf16>
    %130 = arith.extf %129 : vector<8x32xbf16> to vector<8x32xf32>
    %131 = arith.mulf %130, %130 : vector<8x32xf32>
    %cst_54 = arith.constant dense<0.000000e+00> : vector<8xf32>
    %132 = vector.multi_reduction <add>, %131, %cst_54 [1] : vector<8x32xf32> to vector<8xf32>
    %133 = vector.shape_cast %132 : vector<8xf32> to vector<8x1xf32>
    %cst_55 = arith.constant 3.200000e+01 : f32
    %134 = vector.broadcast %cst_55 : f32 to vector<8x1xf32>
    %135 = arith.divf %133, %134 : vector<8x1xf32>
    %cst_56 = arith.constant 9.99999997E-7 : f32
    %136 = vector.broadcast %cst_56 : f32 to vector<8x1xf32>
    %137 = arith.addf %135, %136 : vector<8x1xf32>
    %138 = math.rsqrt %137 : vector<8x1xf32>
    %139 = vector.broadcast %138 : vector<8x1xf32> to vector<8x32xf32>
    %140 = arith.mulf %130, %139 : vector<8x32xf32>
    %141 = arith.truncf %140 : vector<8x32xf32> to vector<8x32xbf16>
    %c0_57 = arith.constant 0 : index
    %c0_58 = arith.constant 0 : index
    %c0_59 = arith.constant 0 : index
    %142 = vector.load %arg6[%c0_57, %c0_58, %c0_59] : memref<2x1x32xbf16, #tpu.memory_space<vmem>>, vector<1x1x32xbf16>
    %143 = vector.shape_cast %142 : vector<1x1x32xbf16> to vector<1x32xbf16>
    %144 = vector.broadcast %143 : vector<1x32xbf16> to vector<8x32xbf16>
    %145 = arith.mulf %141, %144 : vector<8x32xbf16>
    %c0_60 = arith.constant 0 : index
    %c0_61 = arith.constant 0 : index
    %c0_62 = arith.constant 0 : index
    %146 = vector.load %arg7[%c0_60, %c0_61, %c0_62] : memref<2x32x64xbf16, #tpu.memory_space<vmem>>, vector<1x32x64xbf16>
    %147 = vector.shape_cast %146 : vector<1x32x64xbf16> to vector<32x64xbf16>
    %cst_63 = arith.constant dense<0.000000e+00> : vector<8x64xf32>
    %148 = tpu.matmul %145, %147, %cst_63 {dimension_numbers = #tpu.dot_dimension_numbers<[1], [0], [0], [1], [0, 0, 1, 1], [], []>} : vector<8x32xbf16>, vector<32x64xbf16>, vector<8x64xf32> -> vector<8x64xf32>
    %c0_64 = arith.constant 0 : index
    %c0_65 = arith.constant 0 : index
    %c0_66 = arith.constant 0 : index
    %149 = vector.load %arg8[%c0_64, %c0_65, %c0_66] : memref<2x32x64xbf16, #tpu.memory_space<vmem>>, vector<1x32x64xbf16>
    %150 = vector.shape_cast %149 : vector<1x32x64xbf16> to vector<32x64xbf16>
    %cst_67 = arith.constant dense<0.000000e+00> : vector<8x64xf32>
    %151 = tpu.matmul %145, %150, %cst_67 {dimension_numbers = #tpu.dot_dimension_numbers<[1], [0], [0], [1], [0, 0, 1, 1], [], []>} : vector<8x32xbf16>, vector<32x64xbf16>, vector<8x64xf32> -> vector<8x64xf32>
    %152 = arith.negf %148 : vector<8x64xf32>
    %153 = math.exp %152 : vector<8x64xf32>
    %cst_68 = arith.constant 1.000000e+00 : f32
    %154 = vector.broadcast %cst_68 : f32 to vector<8x64xf32>
    %155 = arith.addf %154, %153 : vector<8x64xf32>
    %156 = arith.divf %154, %155 : vector<8x64xf32>
    %157 = arith.mulf %148, %156 : vector<8x64xf32>
    %158 = arith.mulf %157, %151 : vector<8x64xf32>
    %159 = arith.truncf %158 : vector<8x64xf32> to vector<8x64xbf16>
    %c0_69 = arith.constant 0 : index
    %c0_70 = arith.constant 0 : index
    %c0_71 = arith.constant 0 : index
    %160 = vector.load %arg9[%c0_69, %c0_70, %c0_71] : memref<2x64x32xbf16, #tpu.memory_space<vmem>>, vector<1x64x32xbf16>
    %161 = vector.shape_cast %160 : vector<1x64x32xbf16> to vector<64x32xbf16>
    %cst_72 = arith.constant dense<0.000000e+00> : vector<8x32xf32>
    %162 = tpu.matmul %159, %161, %cst_72 {dimension_numbers = #tpu.dot_dimension_numbers<[1], [0], [0], [1], [0, 0, 1, 1], [], []>} : vector<8x64xbf16>, vector<64x32xbf16>, vector<8x32xf32> -> vector<8x32xf32>
    %163 = arith.truncf %162 : vector<8x32xf32> to vector<8x32xbf16>
    %164 = arith.addf %129, %163 : vector<8x32xbf16>
    %165 = arith.extf %164 : vector<8x32xbf16> to vector<8x32xf32>
    %166 = arith.mulf %165, %165 : vector<8x32xf32>
    %cst_73 = arith.constant dense<0.000000e+00> : vector<8xf32>
    %167 = vector.multi_reduction <add>, %166, %cst_73 [1] : vector<8x32xf32> to vector<8xf32>
    %168 = vector.shape_cast %167 : vector<8xf32> to vector<8x1xf32>
    %cst_74 = arith.constant 3.200000e+01 : f32
    %169 = vector.broadcast %cst_74 : f32 to vector<8x1xf32>
    %170 = arith.divf %168, %169 : vector<8x1xf32>
    %cst_75 = arith.constant 9.99999997E-7 : f32
    %171 = vector.broadcast %cst_75 : f32 to vector<8x1xf32>
    %172 = arith.addf %170, %171 : vector<8x1xf32>
    %173 = math.rsqrt %172 : vector<8x1xf32>
    %174 = vector.broadcast %173 : vector<8x1xf32> to vector<8x32xf32>
    %175 = arith.mulf %165, %174 : vector<8x32xf32>
    %176 = arith.truncf %175 : vector<8x32xf32> to vector<8x32xbf16>
    %c1 = arith.constant 1 : index
    %c0_76 = arith.constant 0 : index
    %c0_77 = arith.constant 0 : index
    %177 = vector.load %arg2[%c1, %c0_76, %c0_77] : memref<2x1x32xbf16, #tpu.memory_space<vmem>>, vector<1x1x32xbf16>
    %178 = vector.shape_cast %177 : vector<1x1x32xbf16> to vector<1x32xbf16>
    %179 = vector.broadcast %178 : vector<1x32xbf16> to vector<8x32xbf16>
    %180 = arith.mulf %176, %179 : vector<8x32xbf16>
    %c1_78 = arith.constant 1 : index
    %c0_79 = arith.constant 0 : index
    %c0_80 = arith.constant 0 : index
    %181 = vector.load %arg3[%c1_78, %c0_79, %c0_80] : memref<2x32x64xbf16, #tpu.memory_space<vmem>>, vector<1x32x64xbf16>
    %182 = vector.shape_cast %181 : vector<1x32x64xbf16> to vector<32x64xbf16>
    %cst_81 = arith.constant dense<0.000000e+00> : vector<8x64xf32>
    %183 = tpu.matmul %180, %182, %cst_81 {dimension_numbers = #tpu.dot_dimension_numbers<[1], [0], [0], [1], [0, 0, 1, 1], [], []>} : vector<8x32xbf16>, vector<32x64xbf16>, vector<8x64xf32> -> vector<8x64xf32>
    %c1_82 = arith.constant 1 : index
    %c0_83 = arith.constant 0 : index
    %c0_84 = arith.constant 0 : index
    %184 = vector.load %arg4[%c1_82, %c0_83, %c0_84] : memref<2x1x64xbf16, #tpu.memory_space<vmem>>, vector<1x1x64xbf16>
    %185 = vector.shape_cast %184 : vector<1x1x64xbf16> to vector<1x64xbf16>
    %186 = arith.extf %185 : vector<1x64xbf16> to vector<1x64xf32>
    %187 = vector.broadcast %186 : vector<1x64xf32> to vector<8x64xf32>
    %188 = arith.addf %183, %187 : vector<8x64xf32>
    %189 = arith.truncf %188 : vector<8x64xf32> to vector<8x64xbf16>
    %190 = vector.extract_strided_slice %189 {offsets = [0, 0], sizes = [8, 48], strides = [1, 1]} : vector<8x64xbf16> to vector<8x48xbf16>
    %191 = vector.extract_strided_slice %189 {offsets = [0, 48], sizes = [8, 16], strides = [1, 1]} : vector<8x64xbf16> to vector<8x16xbf16>
    %cst_85 = arith.constant dense<0.000000e+00> : vector<8x48xf32>
    %192 = tpu.matmul %190, %8, %cst_85 {dimension_numbers = #tpu.dot_dimension_numbers<[1], [0], [0], [1], [0, 0, 1, 1], [], []>} : vector<8x48xbf16>, vector<48x48xbf16>, vector<8x48xf32> -> vector<8x48xf32>
    %193 = arith.truncf %192 : vector<8x48xf32> to vector<8x48xbf16>
    %194 = arith.mulf %190, %6 : vector<8x48xbf16>
    %195 = arith.mulf %193, %7 : vector<8x48xbf16>
    %196 = arith.addf %194, %195 : vector<8x48xbf16>
    %197 = vector.extract_strided_slice %196 {offsets = [0, 0], sizes = [8, 8], strides = [1, 1]} : vector<8x48xbf16> to vector<8x8xbf16>
    %198 = vector.extract_strided_slice %196 {offsets = [0, 32], sizes = [8, 8], strides = [1, 1]} : vector<8x48xbf16> to vector<8x8xbf16>
    %199 = vector.extract_strided_slice %191 {offsets = [0, 0], sizes = [8, 8], strides = [1, 1]} : vector<8x16xbf16> to vector<8x8xbf16>
    %cst_86 = arith.constant dense<0.000000e+00> : vector<8x8xf32>
    %200 = tpu.matmul %197, %198, %cst_86 {dimension_numbers = #tpu.dot_dimension_numbers<[1], [1], [0], [0], [0, 0, 1, 0], [], []>} : vector<8x8xbf16>, vector<8x8xbf16>, vector<8x8xf32> -> vector<8x8xf32>
    %cst_87 = arith.constant 0.353553385 : f32
    %201 = vector.broadcast %cst_87 : f32 to vector<8x8xf32>
    %202 = arith.mulf %200, %201 : vector<8x8xf32>
    %203 = arith.addf %202, %5 : vector<8x8xf32>
    %cst_88 = arith.constant dense<0xFF800000> : vector<8xf32>
    %204 = vector.multi_reduction <maximumf>, %203, %cst_88 [1] : vector<8x8xf32> to vector<8xf32>
    %205 = vector.shape_cast %204 : vector<8xf32> to vector<8x1xf32>
    %206 = vector.broadcast %205 : vector<8x1xf32> to vector<8x8xf32>
    %207 = arith.subf %203, %206 : vector<8x8xf32>
    %208 = math.exp %207 : vector<8x8xf32>
    %cst_89 = arith.constant dense<0.000000e+00> : vector<8xf32>
    %209 = vector.multi_reduction <add>, %208, %cst_89 [1] : vector<8x8xf32> to vector<8xf32>
    %210 = vector.shape_cast %209 : vector<8xf32> to vector<8x1xf32>
    %211 = tpu.reciprocal %210 : vector<8x1xf32> -> vector<8x1xf32>
    %212 = vector.broadcast %211 : vector<8x1xf32> to vector<8x8xf32>
    %213 = arith.mulf %208, %212 : vector<8x8xf32>
    %214 = arith.truncf %213 : vector<8x8xf32> to vector<8x8xbf16>
    %cst_90 = arith.constant dense<0.000000e+00> : vector<8x8xf32>
    %215 = tpu.matmul %214, %199, %cst_90 {dimension_numbers = #tpu.dot_dimension_numbers<[1], [0], [0], [1], [0, 0, 1, 1], [], []>} : vector<8x8xbf16>, vector<8x8xbf16>, vector<8x8xf32> -> vector<8x8xf32>
    %c0_91 = arith.constant 0 : index
    %c0_92 = arith.constant 0 : index
    %216 = vector.load %arg15[%c0_91, %c0_92] : memref<8x32xf32, #tpu.memory_space<vmem>>, vector<8x8xf32>
    tpu.vector_store %arg15[%c0_91, %c0_92], %215 {strides = array<i32>} : memref<8x32xf32, #tpu.memory_space<vmem>>, vector<8x8xf32>,
    %217 = vector.extract_strided_slice %196 {offsets = [0, 8], sizes = [8, 8], strides = [1, 1]} : vector<8x48xbf16> to vector<8x8xbf16>
    %218 = vector.extract_strided_slice %196 {offsets = [0, 32], sizes = [8, 8], strides = [1, 1]} : vector<8x48xbf16> to vector<8x8xbf16>
    %219 = vector.extract_strided_slice %191 {offsets = [0, 0], sizes = [8, 8], strides = [1, 1]} : vector<8x16xbf16> to vector<8x8xbf16>
    %cst_93 = arith.constant dense<0.000000e+00> : vector<8x8xf32>
    %220 = tpu.matmul %217, %218, %cst_93 {dimension_numbers = #tpu.dot_dimension_numbers<[1], [1], [0], [0], [0, 0, 1, 0], [], []>} : vector<8x8xbf16>, vector<8x8xbf16>, vector<8x8xf32> -> vector<8x8xf32>
    %cst_94 = arith.constant 0.353553385 : f32
    %221 = vector.broadcast %cst_94 : f32 to vector<8x8xf32>
    %222 = arith.mulf %220, %221 : vector<8x8xf32>
    %223 = arith.addf %222, %5 : vector<8x8xf32>
    %cst_95 = arith.constant dense<0xFF800000> : vector<8xf32>
    %224 = vector.multi_reduction <maximumf>, %223, %cst_95 [1] : vector<8x8xf32> to vector<8xf32>
    %225 = vector.shape_cast %224 : vector<8xf32> to vector<8x1xf32>
    %226 = vector.broadcast %225 : vector<8x1xf32> to vector<8x8xf32>
    %227 = arith.subf %223, %226 : vector<8x8xf32>
    %228 = math.exp %227 : vector<8x8xf32>
    %cst_96 = arith.constant dense<0.000000e+00> : vector<8xf32>
    %229 = vector.multi_reduction <add>, %228, %cst_96 [1] : vector<8x8xf32> to vector<8xf32>
    %230 = vector.shape_cast %229 : vector<8xf32> to vector<8x1xf32>
    %231 = tpu.reciprocal %230 : vector<8x1xf32> -> vector<8x1xf32>
    %232 = vector.broadcast %231 : vector<8x1xf32> to vector<8x8xf32>
    %233 = arith.mulf %228, %232 : vector<8x8xf32>
    %234 = arith.truncf %233 : vector<8x8xf32> to vector<8x8xbf16>
    %cst_97 = arith.constant dense<0.000000e+00> : vector<8x8xf32>
    %235 = tpu.matmul %234, %219, %cst_97 {dimension_numbers = #tpu.dot_dimension_numbers<[1], [0], [0], [1], [0, 0, 1, 1], [], []>} : vector<8x8xbf16>, vector<8x8xbf16>, vector<8x8xf32> -> vector<8x8xf32>
    %c0_98 = arith.constant 0 : index
    %c8_99 = arith.constant 8 : index
    %236 = vector.load %arg15[%c0_98, %c8_99] : memref<8x32xf32, #tpu.memory_space<vmem>>, vector<8x8xf32>
    tpu.vector_store %arg15[%c0_98, %c8_99], %235 {strides = array<i32>} : memref<8x32xf32, #tpu.memory_space<vmem>>, vector<8x8xf32>,
    %237 = vector.extract_strided_slice %196 {offsets = [0, 16], sizes = [8, 8], strides = [1, 1]} : vector<8x48xbf16> to vector<8x8xbf16>
    %238 = vector.extract_strided_slice %196 {offsets = [0, 40], sizes = [8, 8], strides = [1, 1]} : vector<8x48xbf16> to vector<8x8xbf16>
    %239 = vector.extract_strided_slice %191 {offsets = [0, 8], sizes = [8, 8], strides = [1, 1]} : vector<8x16xbf16> to vector<8x8xbf16>
    %cst_100 = arith.constant dense<0.000000e+00> : vector<8x8xf32>
    %240 = tpu.matmul %237, %238, %cst_100 {dimension_numbers = #tpu.dot_dimension_numbers<[1], [1], [0], [0], [0, 0, 1, 0], [], []>} : vector<8x8xbf16>, vector<8x8xbf16>, vector<8x8xf32> -> vector<8x8xf32>
    %cst_101 = arith.constant 0.353553385 : f32
    %241 = vector.broadcast %cst_101 : f32 to vector<8x8xf32>
    %242 = arith.mulf %240, %241 : vector<8x8xf32>
    %243 = arith.addf %242, %5 : vector<8x8xf32>
    %cst_102 = arith.constant dense<0xFF800000> : vector<8xf32>
    %244 = vector.multi_reduction <maximumf>, %243, %cst_102 [1] : vector<8x8xf32> to vector<8xf32>
    %245 = vector.shape_cast %244 : vector<8xf32> to vector<8x1xf32>
    %246 = vector.broadcast %245 : vector<8x1xf32> to vector<8x8xf32>
    %247 = arith.subf %243, %246 : vector<8x8xf32>
    %248 = math.exp %247 : vector<8x8xf32>
    %cst_103 = arith.constant dense<0.000000e+00> : vector<8xf32>
    %249 = vector.multi_reduction <add>, %248, %cst_103 [1] : vector<8x8xf32> to vector<8xf32>
    %250 = vector.shape_cast %249 : vector<8xf32> to vector<8x1xf32>
    %251 = tpu.reciprocal %250 : vector<8x1xf32> -> vector<8x1xf32>
    %252 = vector.broadcast %251 : vector<8x1xf32> to vector<8x8xf32>
    %253 = arith.mulf %248, %252 : vector<8x8xf32>
    %254 = arith.truncf %253 : vector<8x8xf32> to vector<8x8xbf16>
    %cst_104 = arith.constant dense<0.000000e+00> : vector<8x8xf32>
    %255 = tpu.matmul %254, %239, %cst_104 {dimension_numbers = #tpu.dot_dimension_numbers<[1], [0], [0], [1], [0, 0, 1, 1], [], []>} : vector<8x8xbf16>, vector<8x8xbf16>, vector<8x8xf32> -> vector<8x8xf32>
    %c0_105 = arith.constant 0 : index
    %c16_106 = arith.constant 16 : index
    %256 = vector.load %arg15[%c0_105, %c16_106] : memref<8x32xf32, #tpu.memory_space<vmem>>, vector<8x8xf32>
    tpu.vector_store %arg15[%c0_105, %c16_106], %255 {strides = array<i32>} : memref<8x32xf32, #tpu.memory_space<vmem>>, vector<8x8xf32>,
    %257 = vector.extract_strided_slice %196 {offsets = [0, 24], sizes = [8, 8], strides = [1, 1]} : vector<8x48xbf16> to vector<8x8xbf16>
    %258 = vector.extract_strided_slice %196 {offsets = [0, 40], sizes = [8, 8], strides = [1, 1]} : vector<8x48xbf16> to vector<8x8xbf16>
    %259 = vector.extract_strided_slice %191 {offsets = [0, 8], sizes = [8, 8], strides = [1, 1]} : vector<8x16xbf16> to vector<8x8xbf16>
    %cst_107 = arith.constant dense<0.000000e+00> : vector<8x8xf32>
    %260 = tpu.matmul %257, %258, %cst_107 {dimension_numbers = #tpu.dot_dimension_numbers<[1], [1], [0], [0], [0, 0, 1, 0], [], []>} : vector<8x8xbf16>, vector<8x8xbf16>, vector<8x8xf32> -> vector<8x8xf32>
    %cst_108 = arith.constant 0.353553385 : f32
    %261 = vector.broadcast %cst_108 : f32 to vector<8x8xf32>
    %262 = arith.mulf %260, %261 : vector<8x8xf32>
    %263 = arith.addf %262, %5 : vector<8x8xf32>
    %cst_109 = arith.constant dense<0xFF800000> : vector<8xf32>
    %264 = vector.multi_reduction <maximumf>, %263, %cst_109 [1] : vector<8x8xf32> to vector<8xf32>
    %265 = vector.shape_cast %264 : vector<8xf32> to vector<8x1xf32>
    %266 = vector.broadcast %265 : vector<8x1xf32> to vector<8x8xf32>
    %267 = arith.subf %263, %266 : vector<8x8xf32>
    %268 = math.exp %267 : vector<8x8xf32>
    %cst_110 = arith.constant dense<0.000000e+00> : vector<8xf32>
    %269 = vector.multi_reduction <add>, %268, %cst_110 [1] : vector<8x8xf32> to vector<8xf32>
    %270 = vector.shape_cast %269 : vector<8xf32> to vector<8x1xf32>
    %271 = tpu.reciprocal %270 : vector<8x1xf32> -> vector<8x1xf32>
    %272 = vector.broadcast %271 : vector<8x1xf32> to vector<8x8xf32>
    %273 = arith.mulf %268, %272 : vector<8x8xf32>
    %274 = arith.truncf %273 : vector<8x8xf32> to vector<8x8xbf16>
    %cst_111 = arith.constant dense<0.000000e+00> : vector<8x8xf32>
    %275 = tpu.matmul %274, %259, %cst_111 {dimension_numbers = #tpu.dot_dimension_numbers<[1], [0], [0], [1], [0, 0, 1, 1], [], []>} : vector<8x8xbf16>, vector<8x8xbf16>, vector<8x8xf32> -> vector<8x8xf32>
    %c0_112 = arith.constant 0 : index
    %c24_113 = arith.constant 24 : index
    %276 = vector.load %arg15[%c0_112, %c24_113] : memref<8x32xf32, #tpu.memory_space<vmem>>, vector<8x8xf32>
    tpu.vector_store %arg15[%c0_112, %c24_113], %275 {strides = array<i32>} : memref<8x32xf32, #tpu.memory_space<vmem>>, vector<8x8xf32>,
    %c0_114 = arith.constant 0 : index
    %c0_115 = arith.constant 0 : index
    %277 = vector.load %arg15[%c0_114, %c0_115] : memref<8x32xf32, #tpu.memory_space<vmem>>, vector<8x32xf32>
    %278 = arith.truncf %277 : vector<8x32xf32> to vector<8x32xbf16>
    %c1_116 = arith.constant 1 : index
    %c0_117 = arith.constant 0 : index
    %c0_118 = arith.constant 0 : index
    %279 = vector.load %arg5[%c1_116, %c0_117, %c0_118] : memref<2x32x32xbf16, #tpu.memory_space<vmem>>, vector<1x32x32xbf16>
    %280 = vector.shape_cast %279 : vector<1x32x32xbf16> to vector<32x32xbf16>
    %cst_119 = arith.constant dense<0.000000e+00> : vector<8x32xf32>
    %281 = tpu.matmul %278, %280, %cst_119 {dimension_numbers = #tpu.dot_dimension_numbers<[1], [0], [0], [1], [0, 0, 1, 1], [], []>} : vector<8x32xbf16>, vector<32x32xbf16>, vector<8x32xf32> -> vector<8x32xf32>
    %282 = arith.truncf %281 : vector<8x32xf32> to vector<8x32xbf16>
    %283 = arith.addf %164, %282 : vector<8x32xbf16>
    %284 = arith.extf %283 : vector<8x32xbf16> to vector<8x32xf32>
    %285 = arith.mulf %284, %284 : vector<8x32xf32>
    %cst_120 = arith.constant dense<0.000000e+00> : vector<8xf32>
    %286 = vector.multi_reduction <add>, %285, %cst_120 [1] : vector<8x32xf32> to vector<8xf32>
    %287 = vector.shape_cast %286 : vector<8xf32> to vector<8x1xf32>
    %cst_121 = arith.constant 3.200000e+01 : f32
    %288 = vector.broadcast %cst_121 : f32 to vector<8x1xf32>
    %289 = arith.divf %287, %288 : vector<8x1xf32>
    %cst_122 = arith.constant 9.99999997E-7 : f32
    %290 = vector.broadcast %cst_122 : f32 to vector<8x1xf32>
    %291 = arith.addf %289, %290 : vector<8x1xf32>
    %292 = math.rsqrt %291 : vector<8x1xf32>
    %293 = vector.broadcast %292 : vector<8x1xf32> to vector<8x32xf32>
    %294 = arith.mulf %284, %293 : vector<8x32xf32>
    %295 = arith.truncf %294 : vector<8x32xf32> to vector<8x32xbf16>
    %c1_123 = arith.constant 1 : index
    %c0_124 = arith.constant 0 : index
    %c0_125 = arith.constant 0 : index
    %296 = vector.load %arg6[%c1_123, %c0_124, %c0_125] : memref<2x1x32xbf16, #tpu.memory_space<vmem>>, vector<1x1x32xbf16>
    %297 = vector.shape_cast %296 : vector<1x1x32xbf16> to vector<1x32xbf16>
    %298 = vector.broadcast %297 : vector<1x32xbf16> to vector<8x32xbf16>
    %299 = arith.mulf %295, %298 : vector<8x32xbf16>
    %c1_126 = arith.constant 1 : index
    %c0_127 = arith.constant 0 : index
    %c0_128 = arith.constant 0 : index
    %300 = vector.load %arg7[%c1_126, %c0_127, %c0_128] : memref<2x32x64xbf16, #tpu.memory_space<vmem>>, vector<1x32x64xbf16>
    %301 = vector.shape_cast %300 : vector<1x32x64xbf16> to vector<32x64xbf16>
    %cst_129 = arith.constant dense<0.000000e+00> : vector<8x64xf32>
    %302 = tpu.matmul %299, %301, %cst_129 {dimension_numbers = #tpu.dot_dimension_numbers<[1], [0], [0], [1], [0, 0, 1, 1], [], []>} : vector<8x32xbf16>, vector<32x64xbf16>, vector<8x64xf32> -> vector<8x64xf32>
    %c1_130 = arith.constant 1 : index
    %c0_131 = arith.constant 0 : index
    %c0_132 = arith.constant 0 : index
    %303 = vector.load %arg8[%c1_130, %c0_131, %c0_132] : memref<2x32x64xbf16, #tpu.memory_space<vmem>>, vector<1x32x64xbf16>
    %304 = vector.shape_cast %303 : vector<1x32x64xbf16> to vector<32x64xbf16>
    %cst_133 = arith.constant dense<0.000000e+00> : vector<8x64xf32>
    %305 = tpu.matmul %299, %304, %cst_133 {dimension_numbers = #tpu.dot_dimension_numbers<[1], [0], [0], [1], [0, 0, 1, 1], [], []>} : vector<8x32xbf16>, vector<32x64xbf16>, vector<8x64xf32> -> vector<8x64xf32>
    %306 = arith.negf %302 : vector<8x64xf32>
    %307 = math.exp %306 : vector<8x64xf32>
    %cst_134 = arith.constant 1.000000e+00 : f32
    %308 = vector.broadcast %cst_134 : f32 to vector<8x64xf32>
    %309 = arith.addf %308, %307 : vector<8x64xf32>
    %310 = arith.divf %308, %309 : vector<8x64xf32>
    %311 = arith.mulf %302, %310 : vector<8x64xf32>
    %312 = arith.mulf %311, %305 : vector<8x64xf32>
    %313 = arith.truncf %312 : vector<8x64xf32> to vector<8x64xbf16>
    %c1_135 = arith.constant 1 : index
    %c0_136 = arith.constant 0 : index
    %c0_137 = arith.constant 0 : index
    %314 = vector.load %arg9[%c1_135, %c0_136, %c0_137] : memref<2x64x32xbf16, #tpu.memory_space<vmem>>, vector<1x64x32xbf16>
    %315 = vector.shape_cast %314 : vector<1x64x32xbf16> to vector<64x32xbf16>
    %cst_138 = arith.constant dense<0.000000e+00> : vector<8x32xf32>
    %316 = tpu.matmul %313, %315, %cst_138 {dimension_numbers = #tpu.dot_dimension_numbers<[1], [0], [0], [1], [0, 0, 1, 1], [], []>} : vector<8x64xbf16>, vector<64x32xbf16>, vector<8x32xf32> -> vector<8x32xf32>
    %317 = arith.truncf %316 : vector<8x32xf32> to vector<8x32xbf16>
    %318 = arith.addf %283, %317 : vector<8x32xbf16>
    %319 = arith.extf %318 : vector<8x32xbf16> to vector<8x32xf32>
    %320 = arith.mulf %319, %319 : vector<8x32xf32>
    %cst_139 = arith.constant dense<0.000000e+00> : vector<8xf32>
    %321 = vector.multi_reduction <add>, %320, %cst_139 [1] : vector<8x32xf32> to vector<8xf32>
    %322 = vector.shape_cast %321 : vector<8xf32> to vector<8x1xf32>
    %cst_140 = arith.constant 3.200000e+01 : f32
    %323 = vector.broadcast %cst_140 : f32 to vector<8x1xf32>
    %324 = arith.divf %322, %323 : vector<8x1xf32>
    %cst_141 = arith.constant 9.99999997E-7 : f32
    %325 = vector.broadcast %cst_141 : f32 to vector<8x1xf32>
    %326 = arith.addf %324, %325 : vector<8x1xf32>
    %327 = math.rsqrt %326 : vector<8x1xf32>
    %328 = vector.broadcast %327 : vector<8x1xf32> to vector<8x32xf32>
    %329 = arith.mulf %319, %328 : vector<8x32xf32>
    %330 = arith.truncf %329 : vector<8x32xf32> to vector<8x32xbf16>
    %c0_142 = arith.constant 0 : index
    %c0_143 = arith.constant 0 : index
    %331 = vector.load %arg10[%c0_142, %c0_143] : memref<1x32xbf16, #tpu.memory_space<vmem>>, vector<1x32xbf16>
    %332 = vector.broadcast %331 : vector<1x32xbf16> to vector<8x32xbf16>
    %333 = arith.mulf %330, %332 : vector<8x32xbf16>
    %c0_144 = arith.constant 0 : index
    %c0_145 = arith.constant 0 : index
    %c0_146 = arith.constant 0 : index
    %334 = vector.load %arg14[%c0_144, %c0_145, %c0_146] : memref<1x8x32xbf16, #tpu.memory_space<vmem>>, vector<1x8x32xbf16>
    %335 = vector.shape_cast %334 : vector<1x8x32xbf16> to vector<8x32xbf16>
    %336 = vector.shape_cast %333 : vector<8x32xbf16> to vector<1x8x32xbf16>
    tpu.vector_store %arg14[%c0_144, %c0_145, %c0_146], %336 {strides = array<i32>} : memref<1x8x32xbf16, #tpu.memory_space<vmem>>, vector<1x8x32xbf16>,
    return
  }
  func.func @transform_0(%arg0: i32) -> (i32, i32, i32) {
    %c0_i32 = arith.constant 0 : i32
    %c0_i32_0 = arith.constant 0 : i32
    %c0_i32_1 = arith.constant 0 : i32
    return %arg0, %c0_i32, %c0_i32_0 : i32, i32, i32
  }
  func.func @transform_1(%arg0: i32) -> (i32, i32, i32) {
    %c0_i32 = arith.constant 0 : i32
    %c0_i32_0 = arith.constant 0 : i32
    %c0_i32_1 = arith.constant 0 : i32
    %c0_i32_2 = arith.constant 0 : i32
    return %c0_i32, %c0_i32_0, %c0_i32_1 : i32, i32, i32
  }
  func.func @transform_2(%arg0: i32) -> (i32, i32, i32) {
    %c0_i32 = arith.constant 0 : i32
    %c0_i32_0 = arith.constant 0 : i32
    %c0_i32_1 = arith.constant 0 : i32
    %c0_i32_2 = arith.constant 0 : i32
    return %c0_i32, %c0_i32_0, %c0_i32_1 : i32, i32, i32
  }
  func.func @transform_3(%arg0: i32) -> (i32, i32, i32) {
    %c0_i32 = arith.constant 0 : i32
    %c0_i32_0 = arith.constant 0 : i32
    %c0_i32_1 = arith.constant 0 : i32
    %c0_i32_2 = arith.constant 0 : i32
    return %c0_i32, %c0_i32_0, %c0_i32_1 : i32, i32, i32
  }
  func.func @transform_4(%arg0: i32) -> (i32, i32, i32) {
    %c0_i32 = arith.constant 0 : i32
    %c0_i32_0 = arith.constant 0 : i32
    %c0_i32_1 = arith.constant 0 : i32
    %c0_i32_2 = arith.constant 0 : i32
    return %c0_i32, %c0_i32_0, %c0_i32_1 : i32, i32, i32
  }
  func.func @transform_5(%arg0: i32) -> (i32, i32, i32) {
    %c0_i32 = arith.constant 0 : i32
    %c0_i32_0 = arith.constant 0 : i32
    %c0_i32_1 = arith.constant 0 : i32
    %c0_i32_2 = arith.constant 0 : i32
    return %c0_i32, %c0_i32_0, %c0_i32_1 : i32, i32, i32
  }
  func.func @transform_6(%arg0: i32) -> (i32, i32, i32) {
    %c0_i32 = arith.constant 0 : i32
    %c0_i32_0 = arith.constant 0 : i32
    %c0_i32_1 = arith.constant 0 : i32
    %c0_i32_2 = arith.constant 0 : i32
    return %c0_i32, %c0_i32_0, %c0_i32_1 : i32, i32, i32
  }
  func.func @transform_7(%arg0: i32) -> (i32, i32, i32) {
    %c0_i32 = arith.constant 0 : i32
    %c0_i32_0 = arith.constant 0 : i32
    %c0_i32_1 = arith.constant 0 : i32
    %c0_i32_2 = arith.constant 0 : i32
    return %c0_i32, %c0_i32_0, %c0_i32_1 : i32, i32, i32
  }
  func.func @transform_8(%arg0: i32) -> (i32, i32, i32) {
    %c0_i32 = arith.constant 0 : i32
    %c0_i32_0 = arith.constant 0 : i32
    %c0_i32_1 = arith.constant 0 : i32
    %c0_i32_2 = arith.constant 0 : i32
    return %c0_i32, %c0_i32_0, %c0_i32_1 : i32, i32, i32
  }
  func.func @transform_9(%arg0: i32) -> (i32, i32) {
    %c0_i32 = arith.constant 0 : i32
    %c0_i32_0 = arith.constant 0 : i32
    %c0_i32_1 = arith.constant 0 : i32
    return %c0_i32, %c0_i32_0 : i32, i32
  }
  func.func @transform_10(%arg0: i32) -> (i32, i32) {
    %c0_i32 = arith.constant 0 : i32
    %c0_i32_0 = arith.constant 0 : i32
    %c0_i32_1 = arith.constant 0 : i32
    return %c0_i32, %c0_i32_0 : i32, i32
  }
  func.func @transform_11(%arg0: i32) -> (i32, i32) {
    %c0_i32 = arith.constant 0 : i32
    %c0_i32_0 = arith.constant 0 : i32
    %c0_i32_1 = arith.constant 0 : i32
    return %c0_i32, %c0_i32_0 : i32, i32
  }
  func.func @transform_12(%arg0: i32) -> (i32, i32) {
    %c0_i32 = arith.constant 0 : i32
    %c0_i32_0 = arith.constant 0 : i32
    %c0_i32_1 = arith.constant 0 : i32
    return %c0_i32, %c0_i32_0 : i32, i32
  }
  func.func @transform_13(%arg0: i32) -> (i32, i32, i32) {
    %c0_i32 = arith.constant 0 : i32
    %c0_i32_0 = arith.constant 0 : i32
    %c0_i32_1 = arith.constant 0 : i32
    return %arg0, %c0_i32, %c0_i32_0 : i32, i32, i32
  }
}

</mosaic_0001>

<bundles_post_ra>
// kernel: qwen2_forward.1
= control target key start
LH: loop header
LB: loop body
LE: loop exit
PB: predicated region body
PF: predicated region fallthrough
CT: control target
= control target key end

     0   :  { %s3400_s0 = inlined_call_operand.vmem [shape: bf16[2,8,32], index: 0, kind: input, shape index: {}]   ;;  %s3401_s1 = inlined_call_operand.vmem [shape: bf16[2,1,32], index: 1, kind: input, shape index: {}]   ;;  %s3402_s2 = inlined_call_operand.vmem [shape: bf16[2,32,64], index: 2, kind: input, shape index: {}]   ;;  %s3403_s3 = inlined_call_operand.vmem [shape: bf16[2,1,64], index: 3, kind: input, shape index: {}]   ;;  %s3404_s4 = inlined_call_operand.vmem [shape: bf16[2,32,32], index: 4, kind: input, shape index: {}]   ;;  %s3405_s5 = inlined_call_operand.vmem [shape: bf16[2,1,32], index: 5, kind: input, shape index: {}]   ;;  %s3406_s6 = inlined_call_operand.vmem [shape: bf16[2,32,64], index: 6, kind: input, shape index: {}]   ;;  %s3407_s7 = inlined_call_operand.vmem [shape: bf16[2,32,64], index: 7, kind: input, shape index: {}]   ;;  %s3408_s8 = inlined_call_operand.vmem [shape: bf16[2,64,32], index: 8, kind: input, shape index: {}]   ;;  %s3409_s9 = inlined_call_operand.vmem [shape: bf16[1,32], index: 9, kind: input, shape index: {}]   ;;  %s3410_s10 = inlined_call_operand.vmem [shape: bf16[8,48], index: 10, kind: input, shape index: {}]   ;;  %s3411_s11 = inlined_call_operand.vmem [shape: bf16[8,48], index: 11, kind: input, shape index: {}]   ;;  %s3412_s12 = inlined_call_operand.vmem [shape: bf16[48,48], index: 12, kind: input, shape index: {}]   ;;  %s3413_s13 = inlined_call_operand.hbm [shape: bf16[2,8,32], index: 13, kind: output, shape index: {}]  }
   0x1   :  { %3424 = sst [smem:[#allocation6_spill]] %s3400_s0 }
   0x2   :  { %3425 = sst [smem:[#allocation7_spill]] %s3401_s1 }
   0x3   :  { %3426 = sst [smem:[#allocation8_spill]] %s3402_s2 }
   0x4   :  { %3427 = sst [smem:[#allocation9_spill]] %s3403_s3 }
   0x5   :  { %18 = vsyncpa [#allocation4], 0 }
   0x6   :  { %20 = vsyncpa [#allocation4 + $0x1], 0  ;;  %s2944_s25 = smov 0   ;;  %s2946_s26 = smov 0  }
   0x7   :  { %s2948_s27 = smov 0   ;;  %s2950_s28 = smov 0  }
   0x8 LB: > { %s2965_s29 = sadd.s32 4294967295, %s2859_s28   ;;  %s2299_s30 = sadd.s32 4294967294, %s2859_s28   ;;  %s2859_s28 = sphi %s2950_s28, %s3447_s28   ;;  %s2855_s27 = sphi %s2948_s27, %s3446_s27   ;;  %s2851_s26 = sphi %s2946_s26, %s3445_s26   ;;  %s2847_s25 = sphi %s2944_s25, %s3444_s25  }
   0x9   : > { %s2969_s14 = sadd.s32 1, %s2859_s28   ;;  %s311_s15 = sadd.s32 1, %s2855_s27 }
   0xa   : > { %s308_s16 = ssub.s32 %s2859_s28, %s2969_s14  ;;  %p321_p0 = scmp.ne.s32.totalorder %s2855_s27, %s2851_s26 }
   0xb   : > { %p309_p1 = scmp.eq.s32.totalorder %s308_s16, 0  ;;  %p322_p2 = scmp.eq.s32.totalorder %s2965_s29, 1 }
   0xc   : > { %p327_p3 = scmp.ne.s32.totalorder %s2851_s26, %s2847_s25  ;;  %p328_p4 = scmp.eq.s32.totalorder %s2299_s30, 1 }
   0xd   : > { %s2980_s17 = scalar_select %p309_p1, %s2855_s27, %s311_s15  }
   0xe   : > { %p2982_p5 = por %p322_p2, %p321_p0  ;;  %p2986_p6 = por %p328_p4, %p327_p3 }
   0xf   : > { %p2302_p7 = scmp.ge.s32.totalorder %s2859_s28, 1  ;;  %p389_p8 = scmp.lt.s32.totalorder %s2859_s28, 3 }
  0x11   : > { %p390_p9 = pnand %p2302_p7, %p389_p8 }
  0x12   : > { %p432_p10 = scmp.lt.s32.totalorder (!%p390_p9), %s2965_s29, 1  ;;  %s3430_s0 = sld [smem:[#allocation6_spill]] (!%p390_p9) }
  0x13   : > { %393 = sbr.rel (%p390_p9) target bundleno = 4883 (0x1313), region = 72  ;;  %s3431_s2 = sld [smem:[#allocation8_spill]] (!%p390_p9) }
  0x14   : > { %s3432_s1 = sld [smem:[#allocation7_spill]] (!%p390_p9)  ;;  %s3423_s16 = smov (!%p390_p9), 120  }
  0x15   : > { %s3433_s3 = sld [smem:[#allocation9_spill]] (!%p390_p9)  ;;  %s3418_s22 = smov (!%p390_p9), 112  }
  0x16   : > { %s3416_s23 = smov (!%p390_p9), 104   ;;  %s3414_s30 = smov (!%p390_p9), 72  }
  0x17   : > { %s3421_s15 = smov (!%p390_p9), 8  }
  0x18   : > { %s433_s20 = scalar_select %p432_p10, %s2965_s29, 1  ;;  %vm454_vm0 = vcmask 261120   ;;  %v2861_v5 = vmov 0.0   ;;  %vm2862_vm1 = vmmov 0   ;;  %v437_v10 = vlaneseq  ;;  %v3028_v19 = vld [vmem:[%s3412_s12 + $0x10] sm:$0xff]   ;;  %v3035_v21 = vld [vmem:[%s3412_s12 + $0x8] sm:$0xff]  }
  0x19   : > { %v2722_v4 = vld [vmem:[%s3431_s2 + $0x8] sm:$0xff]   ;;  %2467 = vmatprep.subr.bf16.mxu1 %v2861_v5  ;;  %2471 = vmatprep.mubr.msk.bf16.mxu1 %vm2862_vm1, %v2861_v5  ;;  %v2723_v6 = vld [vmem:[%s3431_s2] sm:$0xff]   ;;  %vm557_vm2 = vcmask 392192   ;;  %vm608_vm3 = vcmask 64512   ;;  %vm675_vm5 = vcmask 1043456   ;;  %vm826_vm6 = vcmask 130112  }
  0x1a   : > { %s2304_s21 = sshll.u32 %s433_s20, 2  ;;  %2468 = vmatpush3.bf16.msra.mxu1 %v2722_v4  ;;  %2485 = vmatprep.subr.bf16.mxu0 %v2861_v5  ;;  %v3016_v11 = vshrl.u32 %v437_v10, 7  ;;  %v464_v12 = vld [vmem:[%s3432_s1] sm:$0x1]  ;;  %s3422_s20 = smov 96   ;;  %v440_v49 = vand.u32 127, %v437_v10 }
  0x1b   : > { %s435_s24 = scalar_lea.vmem %s3430_s0, %s2304_s21  ;;  %2469 = vmatprep.subr.bf16.mxu1 %v2861_v5  ;;  %2487 = vmatprep.mubr.msk.bf16.mxu0 %vm2862_vm1, %v2861_v5  ;;  %v466_v13 = vpack.i.b16 %v464_v12, %v464_v12  ;;  %v3045_v22 = vld [vmem:[%s3412_s12] sm:$0xff]   ;;  %s3417_s21 = smov 88   ;;  %vm944_vm7 = vcmask 195712   ;;  %vm1052_vm8 = vcmask 261312   ;;  %vm1292_vm9 = vcmask 523264  }
  0x1c   : > { %v2997_v0 = vld [vmem:[%s435_s24] sm:$0xf]  ;;  %v3022_v14 = vsub.s32 0, %v3016_v11  ;;  %vm441_vm4 = vcmp.gt.s32.totalorder %v440_v49, %v3016_v11  ;;  %s3415_s24 = smov 80   ;;  %vm2224_vm10 = vcmask 257024  }
  0x1d   : > { %v452_v1 = vunpack.c.l.bf16 %v2997_v0  ;;  %v477_v23 = vld [vmem:[%s3433_s3] sm:$0x1]  ;;  %v3098_v51 = vsel %vm441_vm4, -3.3895314e+38, %v2861_v5 }
  0x1e   : > { %2470 = vmatpush3.bf16.msra.mxu1 %v2723_v6  ;;  %v471_v17 = vrot.slane %v466_v13, %v3022_v14  ;;  %v478_v24 = vunpack.c.l.bf16 %v477_v23  ;;  %v3062_v32 = vld [vmem:[%s3410_s10] sm:$0xf] }
  0x1f   : > { %v453_v2 = vmul.f32 %v452_v1, %v452_v1  ;;  %2475 = vmatprep.subr.bf16.mxu1 %v2861_v5  ;;  %v3067_v33 = vld [vmem:[%s3411_s11] sm:$0xf] }
  0x20   : > { %v482_v25 = vrot.slane %v478_v24, %v3022_v14 }
  0x21   : > { %v455_v3 = vsel %vm454_vm0, %v453_v2, 0.0 }
  0x22   : > { %456 = vadd.xlane.f32.xlu0 %v455_v3 }
  0xab   : > { %v457_v7 = vpop.xlane.xlu0 %456 }
  0xac   : > { %v459_v8 = vmul.f32 0.03125, %v457_v7 }
  0xae   : > { %v460_v9 = vadd.f32 1e-06, %v459_v8 }
  0xb0   : > { %2749 = vrsqrt.f32 %v460_v9 }
  0xbd   : > { %v2750_v15 = vpop.eup %2749 }
  0xbe   : > { %v462_v16 = vmul.f32 %v2750_v15, %v452_v1 }
  0xc0   : > { %v463_v18 = vpack.c.bf16 %v462_v16, %v462_v16 }
  0xc2   : > { %v472_v20 = vmul.bf16 %v471_v17, %v463_v18 }
  0xc4   : > { %2472 = vmatmul.mubr.msk.bf16.vlgmr.msra.gmra.mxu1 %vm454_vm0, %v472_v20 }
  0xc5   : > { %2476 = vmatpush3.bf16.msra.mxu1 %v3028_v19  ;;  %2481 = vmatprep.mubr.msk.bf16.mxu1 %vm2862_vm1, %v2861_v5 }
  0xc6   : > { %2477 = vmatprep.subr.bf16.mxu1 %v2861_v5 }
  0xc9   : > { %2478 = vmatpush3.bf16.msra.mxu1 %v3035_v21 }
  0xca   : > { %2479 = vmatprep.subr.bf16.mxu1 %v2861_v5 }
  0xcd   : > { %2480 = vmatpush3.bf16.msra.mxu1 %v3045_v22 }
  0xce   : > { %2491 = vmatprep.subr.bf16.mxu1 %v2861_v5 }
 0x184   : > { %v532_v26 = vpop.f32.mrf.mxu1 }
 0x185   : > { %v533_v27 = vadd.f32 %v532_v26, %v482_v25 }
 0x186   : > { %v2473_v28 = vpop.f32.mrf.mxu1 }
 0x187   : > { %v3053_v29 = vpack.c.bf16 %v533_v27, %v533_v27 }
 0x188   : > { %v535_v30 = vpop.f32.mrf.mxu1 }
 0x189   : > { %2482 = vmatmul.mubr.msk.bf16.vlgmr.msra.gmra.mxu1 %vm557_vm2, %v3053_v29  ;;  %v602_v37 = vmul.bf16 %v3053_v29, %v3062_v32 }
 0x18a   : > { %v2474_v31 = vpop.f32.mrf.mxu1  ;;  %2493 = vmatprep.mubr.msk.bf16.mxu1 %vm2862_vm1, %v2861_v5 }
 0x249   : > { %v595_v34 = vpop.f32.mrf.mxu1 }
 0x24a   : > { %v601_v35 = vpack.c.bf16 %v595_v34, %v595_v34 }
 0x24b   : > { %v2483_v36 = vpop.f32.mrf.mxu1 }
 0x24c   : > { %v603_v38 = vmul.bf16 %v601_v35, %v3067_v33 }
 0x24d   : > { %v598_v39 = vpop.f32.mrf.mxu1 }
 0x24e   : > { %v604_v40 = vadd.bf16 %v603_v38, %v602_v37 }
 0x24f   : > { %v2484_v41 = vpop.f32.mrf.mxu1 }
 0x250   : > { %720 = vrot.lane.b32.xlu1 %v604_v40, %s3423_s16  ;;  %606 = vrot.lane.b32.xlu0 %v604_v40, %s3422_s20  ;;  %s3434_s16 = smov 120   ;;  %s3435_s20 = smov 96  }
 0x254   : > { %830 = vrot.lane.b32.xlu1 %v604_v40, %s3417_s21  ;;  %s3437_s21 = smov 88  }
 0x258   : > { %828 = vrot.lane.b32.xlu1 %v604_v40, %s3418_s22  ;;  %s3420_s22 = smov 16  }
 0x25c   : > { %946 = vrot.lane.b32.xlu1 %v604_v40, %s3416_s23  ;;  %s3438_s23 = smov 104  }
 0x2c2   : > { %v607_v42 = vpop.permute.xlu0 %606  ;;  %v721_v44 = vpop.permute.xlu1 %720 }
 0x2c3   : > { %v613_v43 = vsel %vm608_vm3, %v607_v42, 0 }
 0x2c4   : > { %2486 = vmatpush3.bf16.xpose.msra.mxu0 %v613_v43 }
 0x2c5   : > { %2497 = vmatprep.subr.bf16.mxu0 %v2861_v5 }
 0x2c6   : > { %v831_v45 = vpop.permute.xlu1 %830 }
 0x2c7   : > { %v836_v46 = vsel %vm608_vm3, %v831_v45, 0 }
 0x2ca   : > { %v829_v47 = vpop.permute.xlu1 %828 }
 0x2cb   : > { %2488 = vmatmul.mubr.msk.bf16.vlgmr.msra.gmra.mxu0 %vm608_vm3, %v604_v40 }
 0x2cc   : > { %2498 = vmatpush3.bf16.xpose.msra.mxu0 %v613_v43  ;;  %2499 = vmatprep.mubr.msk.bf16.mxu0 %vm2862_vm1, %v2861_v5 }
 0x2cd   : > { %2509 = vmatprep.subr.bf16.mxu0 %v2861_v5 }
 0x2ce   : > { %v947_v48 = vpop.permute.xlu1 %946 }
 0x2d3   : > { %2500 = vmatmul.mubr.msk.bf16.vlgmr.msra.gmra.mxu0 %vm608_vm3, %v721_v44 }
 0x2d4   : > { %2510 = vmatpush3.bf16.xpose.msra.mxu0 %v836_v46  ;;  %2511 = vmatprep.mubr.msk.bf16.mxu0 %vm2862_vm1, %v2861_v5 }
 0x2d5   : > { %2521 = vmatprep.subr.bf16.mxu0 %v2861_v5 }
 0x2db   : > { %2512 = vmatmul.mubr.msk.bf16.vlgmr.msra.gmra.mxu0 %vm608_vm3, %v829_v47 }
 0x2dc   : > { %2522 = vmatpush3.bf16.xpose.msra.mxu0 %v836_v46  ;;  %2523 = vmatprep.mubr.msk.bf16.mxu0 %vm2862_vm1, %v2861_v5 }
 0x2dd   : > { %2533 = vmatprep.subr.bf16.mxu0 %v2861_v5 }
 0x2e3   : > { %2524 = vmatmul.mubr.msk.bf16.vlgmr.msra.gmra.mxu0 %vm608_vm3, %v947_v48 }
 0x2e4   : > { %2537 = vmatprep.mubr.msk.bf16.mxu0 %vm2862_vm1, %v2861_v5 }
 0x38b   : > { %v649_v50 = vpop.f32.mrf.mxu0 }
 0x38c   : > { %v655_v52 = vmul.f32 0.35355338, %v649_v50 }
 0x38d   : > { %v2489_v53 = vpop.f32.mrf.mxu0 }
 0x38e   : > { %v656_v54 = vadd.f32 %v655_v52, %v3098_v51 }
 0x38f   : > { %v652_v55 = vpop.f32.mrf.mxu0 }
 0x390   : > { %v657_v56 = vsel %vm608_vm3, %v656_v54, -inf }
 0x391   : > { %658 = vmax.xlane.f32.xlu1 %v657_v56  ;;  %v2490_v57 = vpop.f32.mrf.mxu0 }
 0x393   : > { %v759_v58 = vpop.f32.mrf.mxu0 }
 0x394   : > { %v765_v59 = vmul.f32 0.35355338, %v759_v58 }
 0x395   : > { %v2501_v60 = vpop.f32.mrf.mxu0 }
 0x396   : > { %v766_v61 = vadd.f32 %v765_v59, %v3098_v51 }
 0x397   : > { %v762_v62 = vpop.f32.mrf.mxu0 }
 0x398   : > { %v767_v63 = vsel %vm608_vm3, %v766_v61, -inf }
 0x399   : > { %768 = vmax.xlane.f32.xlu0 %v767_v63  ;;  %v2502_v1 = vpop.f32.mrf.mxu0 }
 0x39b   : > { %v872_v2 = vpop.f32.mrf.mxu0 }
 0x39c   : > { %v878_v3 = vmul.f32 0.35355338, %v872_v2 }
 0x39d   : > { %v2513_v4 = vpop.f32.mrf.mxu0 }
 0x39e   : > { %v879_v6 = vadd.f32 %v878_v3, %v3098_v51 }
 0x39f   : > { %v875_v7 = vpop.f32.mrf.mxu0 }
 0x3a0   : > { %v880_v8 = vsel %vm608_vm3, %v879_v6, -inf }
 0x3a1   : > { %881 = vmax.xlane.f32.xlu1 %v880_v8  ;;  %v2514_v9 = vpop.f32.mrf.mxu0 }
 0x3a2   : > { %v2727_v9 = vld [vmem:[%s3404_s4 + $0x8] sm:$0xff]  }
 0x3a3   : > { %v985_v10 = vpop.f32.mrf.mxu0  ;;  %2534 = vmatpush3.bf16.msra.mxu0 %v2727_v9 }
 0x3a4   : > { %v991_v11 = vmul.f32 0.35355338, %v985_v10  ;;  %2535 = vmatprep.subr.bf16.mxu0 %v2861_v5 }
 0x3a5   : > { %v2525_v12 = vpop.f32.mrf.mxu0 }
 0x3a6   : > { %v992_v13 = vadd.f32 %v991_v11, %v3098_v51  ;;  %v2728_v11 = vld [vmem:[%s3404_s4] sm:$0xff]  }
 0x3a7   : > { %v988_v15 = vpop.f32.mrf.mxu0  ;;  %2536 = vmatpush3.bf16.msra.mxu0 %v2728_v11 }
 0x3a8   : > { %v993_v16 = vsel %vm608_vm3, %v992_v13, -inf  ;;  %2549 = vmatprep.subr.bf16.mxu0 %v2861_v5 }
 0x3a9   : > { %994 = vmax.xlane.f32.xlu1 %v993_v16  ;;  %v2526_v17 = vpop.f32.mrf.mxu0 }
 0x41a   : > { %v659_v18 = vpop.xlane.xlu1 %658 }
 0x41b   : > { %v660_v20 = vsub.f32 %v656_v54, %v659_v18 }
 0x41d   : > { %v661_v23 = vmul.f32 1.442695, %v660_v20 }
 0x41f   : > { %2751 = vpow2.f32 %v661_v23 }
 0x422   : > { %v769_v24 = vpop.xlane.xlu0 %768 }
 0x423   : > { %v770_v25 = vsub.f32 %v766_v61, %v769_v24 }
 0x425   : > { %v771_v26 = vmul.f32 1.442695, %v770_v25 }
 0x427   : > { %2753 = vpow2.f32 %v771_v26 }
 0x42a   : > { %v882_v27 = vpop.xlane.xlu1 %881 }
 0x42b   : > { %v883_v28 = vsub.f32 %v879_v6, %v882_v27 }
 0x42c   : > { %v2752_v30 = vpop.eup %2751 }
 0x42d   : > { %v884_v31 = vmul.f32 1.442695, %v883_v28  ;;  %v663_v34 = vsel %vm608_vm3, %v2752_v30, 0.0 }
 0x42e   : > { %664 = vadd.xlane.f32.xlu0 %v663_v34 }
 0x42f   : > { %2755 = vpow2.f32 %v884_v31 }
 0x432   : > { %v995_v35 = vpop.xlane.xlu1 %994 }
 0x433   : > { %v996_v36 = vsub.f32 %v992_v13, %v995_v35 }
 0x434   : > { %v2754_v37 = vpop.eup %2753 }
 0x435   : > { %v997_v38 = vmul.f32 1.442695, %v996_v36  ;;  %v773_v39 = vsel %vm608_vm3, %v2754_v37, 0.0 }
 0x436   : > { %774 = vadd.xlane.f32.xlu1 %v773_v39 }
 0x437   : > { %2757 = vpow2.f32 %v997_v38 }
 0x43c   : > { %v2756_v40 = vpop.eup %2755 }
 0x43d   : > { %v886_v41 = vsel %vm608_vm3, %v2756_v40, 0.0 }
 0x43e   : > { %887 = vadd.xlane.f32.xlu0 %v886_v41  ;;  %v2729_v41 = vld [vmem:[%s3406_s6 + $0x8] sm:$0xff]  }
 0x444   : > { %v2758_v42 = vpop.eup %2757 }
 0x445   : > { %v999_v43 = vsel %vm608_vm3, %v2758_v42, 0.0 }
 0x446   : > { %1000 = vadd.xlane.f32.xlu1 %v999_v43  ;;  %v2732_v43 = vld [vmem:[%s3407_s7] sm:$0xff]  }
 0x454   : > { %670 = vrot.lane.b32.xlu0 %v3053_v29, %s3415_s24  ;;  %s3419_s24 = smov 24  }
 0x457   : > { %892 = vrot.lane.b32.xlu1 %v3053_v29, %s3414_s30  ;;  %s3439_s30 = smov 80  }
 0x4b7   : > { %v665_v44 = vpop.xlane.xlu0 %664 }
 0x4b8   : > { %2759 = vrcp.f32 %v665_v44 }
 0x4bf   : > { %v775_v45 = vpop.xlane.xlu1 %774 }
 0x4c0   : > { %2761 = vrcp.f32 %v775_v45 }
 0x4c5   : > { %v2760_v46 = vpop.eup %2759 }
 0x4c6   : > { %v667_v48 = vmul.f32 %v2760_v46, %v2752_v30 }
 0x4c7   : > { %v888_v47 = vpop.xlane.xlu0 %887 }
 0x4c8   : > { %2763 = vrcp.f32 %v888_v47  ;;  %v668_v52 = vpack.c.bf16 %v667_v48, %v667_v48  ;;  %v1127_v47 = vld [vmem:[%s3405_s5] sm:$0x1] }
 0x4c9   : > { %v1129_v48 = vpack.i.b16 %v1127_v47, %v1127_v47 }
 0x4cb   : > { %v671_v49 = vpop.permute.xlu0 %670 }
 0x4cc   : > { %v677_v50 = vsel %vm675_vm5, %v671_v49, 0 }
 0x4cd   : > { %2492 = vmatpush3.bf16.msra.mxu1 %v677_v50  ;;  %v2762_v53 = vpop.eup %2761 }
 0x4ce   : > { %2503 = vmatprep.subr.bf16.mxu1 %v2861_v5  ;;  %v777_v29 = vmul.f32 %v2762_v53, %v2754_v37 }
 0x4cf   : > { %v1001_v54 = vpop.xlane.xlu1 %1000 }
 0x4d0   : > { %2494 = vmatmul.mubr.msk.bf16.vlgmr.msra.gmra.mxu1 %vm608_vm3, %v668_v52  ;;  %2765 = vrcp.f32 %v1001_v54  ;;  %v778_v56 = vpack.c.bf16 %v777_v29, %v777_v29  ;;  %v1134_v52 = vrot.slane %v1129_v48, %v3022_v14  ;;  %v2733_v29 = vld [vmem:[%s3408_s8 + $0x18] sm:$0xff]  }
 0x4d1   : > { %2504 = vmatpush3.bf16.msra.mxu1 %v677_v50  ;;  %2505 = vmatprep.mubr.msk.bf16.mxu1 %vm2862_vm1, %v2861_v5 }
 0x4d2   : > { %2515 = vmatprep.subr.bf16.mxu1 %v2861_v5 }
 0x4d3   : > { %v893_v55 = vpop.permute.xlu1 %892 }
 0x4d4   : > { %v898_v58 = vsel %vm675_vm5, %v893_v55, 0  ;;  %v2734_v55 = vld [vmem:[%s3408_s8 + $0x10] sm:$0xff]  }
 0x4d5   : > { %v2764_v57 = vpop.eup %2763 }
 0x4d6   : > { %v890_v59 = vmul.f32 %v2764_v57, %v2756_v40  ;;  %v2736_v57 = vld [vmem:[%s3408_s8] sm:$0xff]  }
 0x4d8   : > { %2506 = vmatmul.mubr.msk.bf16.vlgmr.msra.gmra.mxu1 %vm608_vm3, %v778_v56  ;;  %v891_v60 = vpack.c.bf16 %v890_v59, %v890_v59  ;;  %v2735_v56 = vld [vmem:[%s3408_s8 + $0x8] sm:$0xff]  }
 0x4d9   : > { %2516 = vmatpush3.bf16.msra.mxu1 %v898_v58  ;;  %2517 = vmatprep.mubr.msk.bf16.mxu1 %vm2862_vm1, %v2861_v5 }
 0x4da   : > { %2527 = vmatprep.subr.bf16.mxu1 %v2861_v5 }
 0x4dd   : > { %v2766_v61 = vpop.eup %2765 }
 0x4de   : > { %v1003_v62 = vmul.f32 %v2766_v61, %v2758_v42  ;;  %v2730_v42 = vld [vmem:[%s3407_s7 + $0x8] sm:$0xff]  }
 0x4e0   : > { %2518 = vmatmul.mubr.msk.bf16.vlgmr.msra.gmra.mxu1 %vm608_vm3, %v891_v60  ;;  %v1004_v63 = vpack.c.bf16 %v1003_v62, %v1003_v62 }
 0x4e1   : > { %2528 = vmatpush3.bf16.msra.mxu1 %v898_v58  ;;  %2529 = vmatprep.mubr.msk.bf16.mxu1 %vm2862_vm1, %v2861_v5 }
 0x4e2   : > { %2541 = vmatprep.subr.bf16.mxu1 %v2861_v5 }
 0x4e8   : > { %2530 = vmatmul.mubr.msk.bf16.vlgmr.msra.gmra.mxu1 %vm608_vm3, %v1004_v63 }
 0x4e9   : > { %2545 = vmatprep.mubr.msk.bf16.mxu1 %vm2862_vm1, %v2861_v5  ;;  %2542 = vmatpush3.bf16.msra.mxu1 %v2729_v41 }
 0x4ea   : > { %2543 = vmatprep.subr.bf16.mxu1 %v2861_v5 }
 0x590   : > { %v713_v1 = vpop.f32.mrf.mxu1 }
 0x591   : > { %719 = vst.msk [vmem:[#allocation2] sm:$0xff] %vm608_vm3, %v713_v1 }
 0x592   : > { %v2495_v2 = vpop.f32.mrf.mxu1 }
 0x594   : > { %v716_v3 = vpop.f32.mrf.mxu1 }
 0x596   : > { %v2496_v4 = vpop.f32.mrf.mxu1 }
 0x598   : > { %v816_v6 = vpop.f32.mrf.mxu1 }
 0x599   : > { %823 = vrot.lane.b32.xlu1 %v816_v6, %s3421_s15  ;;  %s3441_s15 = smov 8  }
 0x59a   : > { %v2507_v7 = vpop.f32.mrf.mxu1 }
 0x59c   : > { %v819_v8 = vpop.f32.mrf.mxu1 }
 0x59e   : > { %v2508_v10 = vpop.f32.mrf.mxu1 }
 0x5a0   : > { %v934_v12 = vpop.f32.mrf.mxu1 }
 0x5a1   : > { %941 = vrot.lane.b32.xlu0 %v934_v12, %s3420_s22  ;;  %s3440_s22 = smov 72  }
 0x5a2   : > { %v2519_v13 = vpop.f32.mrf.mxu1 }
 0x5a4   : > { %v937_v15 = vpop.f32.mrf.mxu1 }
 0x5a6   : > { %v2520_v16 = vpop.f32.mrf.mxu1 }
 0x5a8   : > { %v1042_v17 = vpop.f32.mrf.mxu1 }
 0x5a9   : > { %1049 = vrot.lane.b32.xlu1 %v1042_v17, %s3419_s24  ;;  %s3436_s24 = smov 112  }
 0x5aa   : > { %v2531_v18 = vpop.f32.mrf.mxu1 }
 0x5ac   : > { %v1045_v20 = vpop.f32.mrf.mxu1 }
 0x5ae   : > { %v2532_v23 = vpop.f32.mrf.mxu1 }
 0x60b   : > { %v824_v24 = vpop.permute.xlu1 %823 }
 0x60c   : > { %827 = vst.msk [vmem:[#allocation2] sm:$0xff] %vm826_vm6, %v824_v24  ;;  %v2737_v24 = vld [vmem:[%s3431_s2 + $0x18] sm:$0xff]  }
 0x613   : > { %v942_v25 = vpop.permute.xlu0 %941 }
 0x614   : > { %945 = vst.msk [vmem:[#allocation2] sm:$0xff] %vm944_vm7, %v942_v25  ;;  %v2738_v25 = vld [vmem:[%s3431_s2 + $0x10] sm:$0xff]   ;;  %s2873_s2 = smov [#allocation3]  }
 0x61b   : > { %v1050_v26 = vpop.permute.xlu1 %1049 }
 0x61c   : > { %1053 = vst.msk [vmem:[#allocation2] sm:$0xff] %vm1052_vm8, %v1050_v26 }
 0x623   : > { %v1054_v27 = vld [vmem:[#allocation2] sm:$0xff] }
 0x624   : > { %v1055_v28 = vpack.c.bf16 %v1054_v27, %v1054_v27 }
 0x626   : > { %2538 = vmatmul.mubr.msk.bf16.vlgmr.msra.gmra.mxu0 %vm454_vm0, %v1055_v28 }
 0x627   : > { %2553 = vmatprep.mubr.msk.bf16.mxu0 %vm2862_vm1, %v2861_v5  ;;  %2550 = vmatpush3.bf16.msra.mxu0 %v2730_v42 }
 0x628   : > { %2551 = vmatprep.subr.bf16.mxu0 %v2861_v5 }
 0x62b   : > { %2552 = vmatpush3.bf16.msra.mxu0 %v2732_v43 }
 0x62c   : > { %2569 = vmatprep.subr.bf16.mxu0 %v2861_v5 }
 0x6e6   : > { %v1109_v30 = vpop.f32.mrf.mxu0 }
 0x6e7   : > { %v1115_v31 = vpack.c.bf16 %v1109_v30, %v1109_v30  ;;  %v2335_v30 = vld [vmem:[%s3432_s1 + $0x1] sm:$0x1] }
 0x6e8   : > { %v2539_v34 = vpop.f32.mrf.mxu0 }
 0x6e9   : > { %v3153_v35 = vadd.bf16 %v1115_v31, %v2997_v0  ;;  %v2731_v0 = vld [vmem:[%s3406_s6] sm:$0xff]   ;;  %v1351_v31 = vpack.i.b16 %v2335_v30, %v2335_v30 }
 0x6ea   : > { %v1112_v36 = vpop.f32.mrf.mxu0  ;;  %2544 = vmatpush3.bf16.msra.mxu1 %v2731_v0 }
 0x6eb   : > { %v1117_v37 = vunpack.c.l.bf16 %v3153_v35  ;;  %2557 = vmatprep.subr.bf16.mxu1 %v2861_v5  ;;  %v1356_v36 = vrot.slane %v1351_v31, %v3022_v14 }
 0x6ec   : > { %v2540_v38 = vpop.f32.mrf.mxu0 }
 0x6ed   : > { %v1118_v39 = vmul.f32 %v1117_v37, %v1117_v37 }
 0x6ef   : > { %v1119_v40 = vsel %vm454_vm0, %v1118_v39, 0.0  ;;  %v2340_v39 = vld [vmem:[%s3433_s3 + $0x1] sm:$0x1]  ;;  %s2803_s3 = sshll.u32 %s2873_s2, 4  ;;  %s2804_s3 = int_to_ptr.vmem [resolvable:$false] %s2803_s3 }
 0x6f0   : > { %1120 = vadd.xlane.f32.xlu0 %v1119_v40  ;;  %v1365_v40 = vunpack.c.l.bf16 %v2340_v39 }
 0x779   : > { %v1121_v44 = vpop.xlane.xlu0 %1120 }
 0x77a   : > { %v1122_v45 = vmul.f32 0.03125, %v1121_v44 }
 0x77c   : > { %v1123_v46 = vadd.f32 1e-06, %v1122_v45 }
 0x77e   : > { %2767 = vrsqrt.f32 %v1123_v46 }
 0x78b   : > { %v2768_v49 = vpop.eup %2767 }
 0x78c   : > { %v1125_v50 = vmul.f32 %v2768_v49, %v1117_v37 }
 0x78e   : > { %v1126_v53 = vpack.c.bf16 %v1125_v50, %v1125_v50 }
 0x790   : > { %v1135_v54 = vmul.bf16 %v1134_v52, %v1126_v53 }
 0x792   : > { %2546 = vmatmul.mubr.msk.bf16.vlgmr.msra.gmra.mxu1 %vm454_vm0, %v1135_v54  ;;  %2554 = vmatmul.mubr.msk.bf16.vlgmr.msra.gmra.mxu0 %vm454_vm0, %v1135_v54 }
 0x793   : > { %2565 = vmatprep.mubr.msk.bf16.mxu1 %vm2862_vm1, %v2861_v5  ;;  %2573 = vmatprep.mubr.msk.bf16.mxu0 %vm2862_vm1, %v2861_v5 }
 0x794   : > { %2558 = vmatpush3.bf16.msra.mxu1 %v2733_v29  ;;  %2570 = vmatpush3.bf16.msra.mxu0 %v2737_v24 }
 0x795   : > { %2559 = vmatprep.subr.bf16.mxu1 %v2861_v5  ;;  %2571 = vmatprep.subr.bf16.mxu0 %v2861_v5 }
 0x798   : > { %2560 = vmatpush3.bf16.msra.mxu1 %v2734_v55  ;;  %2572 = vmatpush3.bf16.msra.mxu0 %v2738_v25 }
 0x799   : > { %2561 = vmatprep.subr.bf16.mxu1 %v2861_v5  ;;  %2577 = vmatprep.subr.bf16.mxu0 %v2861_v5 }
 0x79c   : > { %2562 = vmatpush3.bf16.msra.mxu1 %v2735_v56 }
 0x79d   : > { %2563 = vmatprep.subr.bf16.mxu1 %v2861_v5 }
 0x7a0   : > { %2564 = vmatpush3.bf16.msra.mxu1 %v2736_v57 }
 0x7a1   : > { %2587 = vmatprep.subr.bf16.mxu1 %v2861_v5 }
 0x852   : > { %v1189_v58 = vpop.f32.mrf.mxu1  ;;  %v1245_v59 = vpop.f32.mrf.mxu0 }
 0x853   : > { %v2329_v60 = vmul.f32 -1.442695, %v1189_v58 }
 0x854   : > { %v2547_v61 = vpop.f32.mrf.mxu1  ;;  %v2555_v62 = vpop.f32.mrf.mxu0 }
 0x855   : > { %2769 = vpow2.f32 %v2329_v60 }
 0x856   : > { %v1192_v63 = vpop.f32.mrf.mxu1  ;;  %v1248_v1 = vpop.f32.mrf.mxu0 }
 0x858   : > { %v2548_v2 = vpop.f32.mrf.mxu1  ;;  %v2556_v3 = vpop.f32.mrf.mxu0 }
 0x862   : > { %v2770_v4 = vpop.eup %2769 }
 0x863   : > { %v1254_v6 = vadd.f32 1.0, %v2770_v4 }
 0x865   : > { %2771 = vrcp.f32 %v1254_v6 }
 0x872   : > { %v2772_v7 = vpop.eup %2771 }
 0x873   : > { %v1257_v8 = vmul.f32 %v2772_v7, %v1189_v58 }
 0x875   : > { %v1258_v9 = vmul.f32 %v1257_v8, %v1245_v59 }
 0x877   : > { %v1259_v10 = vpack.c.bf16 %v1258_v9, %v1258_v9 }
 0x879   : > { %2566 = vmatmul.mubr.msk.bf16.vlgmr.msra.gmra.mxu1 %vm1292_vm9, %v1259_v10 }
 0x87a   : > { %2589 = vmatprep.mubr.msk.bf16.mxu1 %vm2862_vm1, %v2861_v5 }
 0x939   : > { %v1330_v11 = vpop.f32.mrf.mxu1 }
 0x93a   : > { %v1336_v12 = vpack.c.bf16 %v1330_v11, %v1330_v11 }
 0x93b   : > { %v2567_v13 = vpop.f32.mrf.mxu1 }
 0x93c   : > { %v3203_v15 = vadd.bf16 %v1336_v12, %v3153_v35 }
 0x93d   : > { %v1333_v16 = vpop.f32.mrf.mxu1 }
 0x93e   : > { %v1338_v17 = vunpack.c.l.bf16 %v3203_v15 }
 0x93f   : > { %v2568_v18 = vpop.f32.mrf.mxu1 }
 0x940   : > { %v1339_v20 = vmul.f32 %v1338_v17, %v1338_v17 }
 0x942   : > { %v1340_v23 = vsel %vm454_vm0, %v1339_v20, 0.0 }
 0x943   : > { %1341 = vadd.xlane.f32.xlu1 %v1340_v23 }
 0x9cc   : > { %v1342_v26 = vpop.xlane.xlu1 %1341 }
 0x9cd   : > { %v1343_v27 = vmul.f32 0.03125, %v1342_v26 }
 0x9cf   : > { %v1344_v28 = vadd.f32 1e-06, %v1343_v27 }
 0x9d1   : > { %2773 = vrsqrt.f32 %v1344_v28 }
 0x9de   : > { %v2774_v34 = vpop.eup %2773 }
 0x9df   : > { %v1346_v35 = vmul.f32 %v2774_v34, %v1338_v17 }
 0x9e1   : > { %v1347_v37 = vpack.c.bf16 %v1346_v35, %v1346_v35 }
 0x9e3   : > { %v1357_v38 = vmul.bf16 %v1356_v36, %v1347_v37 }
 0x9e5   : > { %2574 = vmatmul.mubr.msk.bf16.vlgmr.msra.gmra.mxu0 %vm454_vm0, %v1357_v38 }
 0x9e6   : > { %2578 = vmatpush3.bf16.msra.mxu0 %v3028_v19  ;;  %2583 = vmatprep.mubr.msk.bf16.mxu0 %vm2862_vm1, %v2861_v5  ;;  %v1369_v19 = vrot.slane %v1365_v40, %v3022_v14 }
 0x9e7   : > { %2579 = vmatprep.subr.bf16.mxu0 %v2861_v5 }
 0x9ea   : > { %2580 = vmatpush3.bf16.msra.mxu0 %v3035_v21 }
 0x9eb   : > { %2581 = vmatprep.subr.bf16.mxu0 %v2861_v5 }
 0x9ee   : > { %2582 = vmatpush3.bf16.msra.mxu0 %v3045_v22 }
 0x9ef   : > { %2593 = vmatprep.subr.bf16.mxu0 %v2861_v5 }
 0xaa5   : > { %v1419_v41 = vpop.f32.mrf.mxu0 }
 0xaa6   : > { %v1420_v42 = vadd.f32 %v1419_v41, %v1369_v19 }
 0xaa7   : > { %v2575_v0 = vpop.f32.mrf.mxu0 }
 0xaa8   : > { %v3232_v43 = vpack.c.bf16 %v1420_v42, %v1420_v42 }
 0xaa9   : > { %v1422_v44 = vpop.f32.mrf.mxu0 }
 0xaaa   : > { %2584 = vmatmul.mubr.msk.bf16.vlgmr.msra.gmra.mxu0 %vm557_vm2, %v3232_v43  ;;  %v1470_v47 = vmul.bf16 %v3232_v43, %v3062_v32 }
 0xaab   : > { %v2576_v21 = vpop.f32.mrf.mxu0  ;;  %2595 = vmatprep.mubr.msk.bf16.mxu0 %vm2862_vm1, %v2861_v5 }
 0xb6a   : > { %v1463_v22 = vpop.f32.mrf.mxu0 }
 0xb6b   : > { %v1469_v45 = vpack.c.bf16 %v1463_v22, %v1463_v22 }
 0xb6c   : > { %v2585_v46 = vpop.f32.mrf.mxu0 }
 0xb6d   : > { %v1471_v48 = vmul.bf16 %v1469_v45, %v3067_v33 }
 0xb6e   : > { %v1466_v49 = vpop.f32.mrf.mxu0 }
 0xb6f   : > { %v1472_v50 = vadd.bf16 %v1471_v48, %v1470_v47 }
 0xb70   : > { %v2586_v52 = vpop.f32.mrf.mxu0 }
 0xb71   : > { %1586 = vrot.lane.b32.xlu1 %v1472_v50, %s3434_s16  ;;  %1474 = vrot.lane.b32.xlu0 %v1472_v50, %s3435_s20  ;;  %s429_s16 = sand.u32 1, %s2851_s26  }
 0xb72   : > { %s2227_s20 = scalar_lea.sflag [#allocation4], %s429_s16 }
 0xb75   : > { %1693 = vrot.lane.b32.xlu1 %v1472_v50, %s3436_s24  ;;  %1695 = vrot.lane.b32.xlu0 %v1472_v50, %s3437_s21  ;;  %s2303_s21 = sshll.u32 %s429_s16, 2 }
 0xb79   : > { %1810 = vrot.lane.b32.xlu0 %v1472_v50, %s3438_s23  ;;  %s3442_s23 = smov 16  }
 0xbe3   : > { %v1475_v53 = vpop.permute.xlu0 %1474  ;;  %v1587_v33 = vpop.permute.xlu1 %1586 }
 0xbe4   : > { %v1480_v54 = vsel %vm608_vm3, %v1475_v53, 0 }
 0xbe5   : > { %2588 = vmatpush3.bf16.xpose.msra.mxu1 %v1480_v54 }
 0xbe6   : > { %2599 = vmatprep.subr.bf16.mxu1 %v2861_v5 }
 0xbe7   : > { %v1696_v32 = vpop.permute.xlu0 %1695  ;;  %v1694_v55 = vpop.permute.xlu1 %1693 }
 0xbe8   : > { %v1701_v29 = vsel %vm608_vm3, %v1696_v32, 0 }
 0xbeb   : > { %v1811_v56 = vpop.permute.xlu0 %1810 }
 0xbec   : > { %2590 = vmatmul.mubr.msk.bf16.vlgmr.msra.gmra.mxu1 %vm608_vm3, %v1472_v50 }
 0xbed   : > { %2600 = vmatpush3.bf16.xpose.msra.mxu1 %v1480_v54  ;;  %2601 = vmatprep.mubr.msk.bf16.mxu1 %vm2862_vm1, %v2861_v5 }
 0xbee   : > { %2611 = vmatprep.subr.bf16.mxu1 %v2861_v5 }
 0xbf4   : > { %2602 = vmatmul.mubr.msk.bf16.vlgmr.msra.gmra.mxu1 %vm608_vm3, %v1587_v33 }
 0xbf5   : > { %2612 = vmatpush3.bf16.xpose.msra.mxu1 %v1701_v29  ;;  %2613 = vmatprep.mubr.msk.bf16.mxu1 %vm2862_vm1, %v2861_v5 }
 0xbf6   : > { %2623 = vmatprep.subr.bf16.mxu1 %v2861_v5 }
 0xbfc   : > { %2614 = vmatmul.mubr.msk.bf16.vlgmr.msra.gmra.mxu1 %vm608_vm3, %v1694_v55 }
 0xbfd   : > { %2624 = vmatpush3.bf16.xpose.msra.mxu1 %v1701_v29  ;;  %2625 = vmatprep.mubr.msk.bf16.mxu1 %vm2862_vm1, %v2861_v5 }
 0xbfe   : > { %2635 = vmatprep.subr.bf16.mxu1 %v2861_v5 }
 0xc04   : > { %2626 = vmatmul.mubr.msk.bf16.vlgmr.msra.gmra.mxu1 %vm608_vm3, %v1811_v56 }
 0xc05   : > { %2639 = vmatprep.mubr.msk.bf16.mxu1 %vm2862_vm1, %v2861_v5 }
 0xcac   : > { %v1516_v57 = vpop.f32.mrf.mxu1 }
 0xcad   : > { %v1522_v58 = vmul.f32 0.35355338, %v1516_v57 }
 0xcae   : > { %v2591_v59 = vpop.f32.mrf.mxu1 }
 0xcaf   : > { %v1523_v60 = vadd.f32 %v1522_v58, %v3098_v51 }
 0xcb0   : > { %v1519_v61 = vpop.f32.mrf.mxu1 }
 0xcb1   : > { %v1524_v62 = vsel %vm608_vm3, %v1523_v60, -inf }
 0xcb2   : > { %1525 = vmax.xlane.f32.xlu1 %v1524_v62  ;;  %v2592_v63 = vpop.f32.mrf.mxu1 }
 0xcb4   : > { %v1625_v1 = vpop.f32.mrf.mxu1 }
 0xcb5   : > { %v1631_v2 = vmul.f32 0.35355338, %v1625_v1 }
 0xcb6   : > { %v2603_v3 = vpop.f32.mrf.mxu1 }
 0xcb7   : > { %v1632_v4 = vadd.f32 %v1631_v2, %v3098_v51 }
 0xcb8   : > { %v1628_v6 = vpop.f32.mrf.mxu1 }
 0xcb9   : > { %v1633_v7 = vsel %vm608_vm3, %v1632_v4, -inf }
 0xcba   : > { %1634 = vmax.xlane.f32.xlu0 %v1633_v7  ;;  %v2604_v8 = vpop.f32.mrf.mxu1 }
 0xcbc   : > { %v1737_v9 = vpop.f32.mrf.mxu1 }
 0xcbd   : > { %v1743_v10 = vmul.f32 0.35355338, %v1737_v9  ;;  %v2739_v9 = vld [vmem:[%s3404_s4 + $0x18] sm:$0xff]  }
 0xcbe   : > { %v2615_v11 = vpop.f32.mrf.mxu1  ;;  %2636 = vmatpush3.bf16.msra.mxu1 %v2739_v9 }
 0xcbf   : > { %v1744_v12 = vadd.f32 %v1743_v10, %v3098_v51  ;;  %v2740_v11 = vld [vmem:[%s3404_s4 + $0x10] sm:$0xff]   ;;  %2637 = vmatprep.subr.bf16.mxu1 %v2861_v5 }
 0xcc0   : > { %v1740_v13 = vpop.f32.mrf.mxu1 }
 0xcc1   : > { %v1745_v16 = vsel %vm608_vm3, %v1744_v12, -inf }
 0xcc2   : > { %1746 = vmax.xlane.f32.xlu0 %v1745_v16  ;;  %v2616_v17 = vpop.f32.mrf.mxu1  ;;  %2638 = vmatpush3.bf16.msra.mxu1 %v2740_v11 }
 0xcc3   : > { %2651 = vmatprep.subr.bf16.mxu1 %v2861_v5 }
 0xcc4   : > { %v1849_v18 = vpop.f32.mrf.mxu1 }
 0xcc5   : > { %v1855_v20 = vmul.f32 0.35355338, %v1849_v18 }
 0xcc6   : > { %v2627_v23 = vpop.f32.mrf.mxu1 }
 0xcc7   : > { %v1856_v24 = vadd.f32 %v1855_v20, %v3098_v51 }
 0xcc8   : > { %v1852_v25 = vpop.f32.mrf.mxu1 }
 0xcc9   : > { %v1857_v26 = vsel %vm608_vm3, %v1856_v24, -inf }
 0xcca   : > { %1858 = vmax.xlane.f32.xlu1 %v1857_v26  ;;  %v2628_v27 = vpop.f32.mrf.mxu1 }
 0xd3b   : > { %v1526_v28 = vpop.xlane.xlu1 %1525 }
 0xd3c   : > { %v1527_v30 = vsub.f32 %v1523_v60, %v1526_v28 }
 0xd3e   : > { %v1528_v31 = vmul.f32 1.442695, %v1527_v30 }
 0xd40   : > { %2775 = vpow2.f32 %v1528_v31 }
 0xd43   : > { %v1635_v34 = vpop.xlane.xlu0 %1634 }
 0xd44   : > { %v1636_v35 = vsub.f32 %v1632_v4, %v1635_v34 }
 0xd46   : > { %v1637_v36 = vmul.f32 1.442695, %v1636_v35 }
 0xd48   : > { %2777 = vpow2.f32 %v1637_v36 }
 0xd4b   : > { %v1747_v37 = vpop.xlane.xlu0 %1746 }
 0xd4c   : > { %v1748_v38 = vsub.f32 %v1744_v12, %v1747_v37 }
 0xd4d   : > { %v2776_v39 = vpop.eup %2775 }
 0xd4e   : > { %v1749_v40 = vmul.f32 1.442695, %v1748_v38  ;;  %v1530_v19 = vsel %vm608_vm3, %v2776_v39, 0.0 }
 0xd4f   : > { %1531 = vadd.xlane.f32.xlu0 %v1530_v19 }
 0xd50   : > { %2779 = vpow2.f32 %v1749_v40 }
 0xd53   : > { %v1859_v51 = vpop.xlane.xlu1 %1858 }
 0xd54   : > { %v1860_v41 = vsub.f32 %v1856_v24, %v1859_v51  ;;  %v2741_v51 = vld [vmem:[%s3406_s6 + $0x18] sm:$0xff]  }
 0xd55   : > { %v2778_v42 = vpop.eup %2777 }
 0xd56   : > { %v1861_v0 = vmul.f32 1.442695, %v1860_v41  ;;  %v1639_v44 = vsel %vm608_vm3, %v2778_v42, 0.0  ;;  %v2742_v41 = vld [vmem:[%s3407_s7 + $0x18] sm:$0xff]  }
 0xd57   : > { %1640 = vadd.xlane.f32.xlu1 %v1639_v44 }
 0xd58   : > { %2781 = vpow2.f32 %v1861_v0 }
 0xd5d   : > { %v2780_v21 = vpop.eup %2779 }
 0xd5e   : > { %v1751_v22 = vsel %vm608_vm3, %v2780_v21, 0.0 }
 0xd5f   : > { %1752 = vadd.xlane.f32.xlu0 %v1751_v22  ;;  %v2360_v22 = vld [vmem:[%s3405_s5 + $0x1] sm:$0x1] }
 0xd65   : > { %v2782_v45 = vpop.eup %2781 }
 0xd66   : > { %v1863_v46 = vsel %vm608_vm3, %v2782_v45, 0.0 }
 0xd67   : > { %1864 = vadd.xlane.f32.xlu1 %v1863_v46 }
 0xd75   : > { %1537 = vrot.lane.b32.xlu0 %v3232_v43, %s3439_s30  ;;  %s3443_s30 = smov 24  }
 0xd78   : > { %1757 = vrot.lane.b32.xlu1 %v3232_v43, %s3440_s22 }
 0xdd8   : > { %v1532_v47 = vpop.xlane.xlu0 %1531 }
 0xdd9   : > { %2783 = vrcp.f32 %v1532_v47 }
 0xde0   : > { %v1641_v48 = vpop.xlane.xlu1 %1640 }
 0xde1   : > { %2785 = vrcp.f32 %v1641_v48 }
 0xde6   : > { %v2784_v49 = vpop.eup %2783 }
 0xde7   : > { %v1534_v52 = vmul.f32 %v2784_v49, %v2776_v39 }
 0xde8   : > { %v1753_v50 = vpop.xlane.xlu0 %1752 }
 0xde9   : > { %2787 = vrcp.f32 %v1753_v50  ;;  %v1535_v32 = vpack.c.bf16 %v1534_v52, %v1534_v52  ;;  %v2745_v52 = vld [vmem:[%s3408_s8 + $0x38] sm:$0xff]  }
 0xdec   : > { %v1538_v53 = vpop.permute.xlu0 %1537 }
 0xded   : > { %v1543_v54 = vsel %vm675_vm5, %v1538_v53, 0  ;;  %v2746_v53 = vld [vmem:[%s3408_s8 + $0x30] sm:$0xff]  }
 0xdee   : > { %2594 = vmatpush3.bf16.msra.mxu0 %v1543_v54  ;;  %v2786_v33 = vpop.eup %2785 }
 0xdef   : > { %2605 = vmatprep.subr.bf16.mxu0 %v2861_v5  ;;  %v1643_v43 = vmul.f32 %v2786_v33, %v2778_v42  ;;  %v2744_v42 = vld [vmem:[%s3407_s7 + $0x10] sm:$0xff]  }
 0xdf0   : > { %v1865_v29 = vpop.xlane.xlu1 %1864 }
 0xdf1   : > { %2596 = vmatmul.mubr.msk.bf16.vlgmr.msra.gmra.mxu0 %vm608_vm3, %v1535_v32  ;;  %2789 = vrcp.f32 %v1865_v29  ;;  %v1644_v56 = vpack.c.bf16 %v1643_v43, %v1643_v43  ;;  %v2748_v32 = vld [vmem:[%s3408_s8 + $0x20] sm:$0xff]  }
 0xdf2   : > { %2606 = vmatpush3.bf16.msra.mxu0 %v1543_v54  ;;  %2607 = vmatprep.mubr.msk.bf16.mxu0 %vm2862_vm1, %v2861_v5  ;;  %v2747_v54 = vld [vmem:[%s3408_s8 + $0x28] sm:$0xff]  }
 0xdf3   : > { %2617 = vmatprep.subr.bf16.mxu0 %v2861_v5 }
 0xdf4   : > { %v1758_v55 = vpop.permute.xlu1 %1757 }
 0xdf5   : > { %v1763_v58 = vsel %vm675_vm5, %v1758_v55, 0 }
 0xdf6   : > { %v2788_v57 = vpop.eup %2787 }
 0xdf7   : > { %v1755_v59 = vmul.f32 %v2788_v57, %v2780_v21 }
 0xdf9   : > { %2608 = vmatmul.mubr.msk.bf16.vlgmr.msra.gmra.mxu0 %vm608_vm3, %v1644_v56  ;;  %v1756_v60 = vpack.c.bf16 %v1755_v59, %v1755_v59 }
 0xdfa   : > { %2618 = vmatpush3.bf16.msra.mxu0 %v1763_v58  ;;  %2619 = vmatprep.mubr.msk.bf16.mxu0 %vm2862_vm1, %v2861_v5 }
 0xdfb   : > { %2629 = vmatprep.subr.bf16.mxu0 %v2861_v5 }
 0xdfe   : > { %v2790_v61 = vpop.eup %2789 }
 0xdff   : > { %v1867_v62 = vmul.f32 %v2790_v61, %v2782_v45  ;;  %v1994_v45 = vpack.i.b16 %v2360_v22, %v2360_v22 }
 0xe01   : > { %2620 = vmatmul.mubr.msk.bf16.vlgmr.msra.gmra.mxu0 %vm608_vm3, %v1756_v60  ;;  %v1868_v63 = vpack.c.bf16 %v1867_v62, %v1867_v62  ;;  %v1999_v48 = vrot.slane %v1994_v45, %v3022_v14 }
 0xe02   : > { %2630 = vmatpush3.bf16.msra.mxu0 %v1763_v58  ;;  %2631 = vmatprep.mubr.msk.bf16.mxu0 %vm2862_vm1, %v2861_v5 }
 0xe03   : > { %2643 = vmatprep.subr.bf16.mxu0 %v2861_v5 }
 0xe09   : > { %2632 = vmatmul.mubr.msk.bf16.vlgmr.msra.gmra.mxu0 %vm608_vm3, %v1868_v63 }
 0xe0a   : > { %2647 = vmatprep.mubr.msk.bf16.mxu0 %vm2862_vm1, %v2861_v5  ;;  %2644 = vmatpush3.bf16.msra.mxu0 %v2741_v51 }
 0xe0b   : > { %2645 = vmatprep.subr.bf16.mxu0 %v2861_v5 }
 0xeb1   : > { %v1579_v1 = vpop.f32.mrf.mxu0 }
 0xeb2   : > { %1585 = vst.msk [vmem:[#allocation2] sm:$0xff] %vm608_vm3, %v1579_v1 }
 0xeb3   : > { %v2597_v2 = vpop.f32.mrf.mxu0 }
 0xeb5   : > { %v1582_v3 = vpop.f32.mrf.mxu0 }
 0xeb7   : > { %v2598_v4 = vpop.f32.mrf.mxu0 }
 0xeb9   : > { %v1682_v6 = vpop.f32.mrf.mxu0 }
 0xeba   : > { %1689 = vrot.lane.b32.xlu1 %v1682_v6, %s3441_s15 }
 0xebb   : > { %v2609_v7 = vpop.f32.mrf.mxu0 }
 0xebd   : > { %v1685_v8 = vpop.f32.mrf.mxu0 }
 0xebf   : > { %v2610_v10 = vpop.f32.mrf.mxu0 }
 0xec1   : > { %v1799_v12 = vpop.f32.mrf.mxu0 }
 0xec2   : > { %1806 = vrot.lane.b32.xlu0 %v1799_v12, %s3442_s23  ;;  %s2390_s23 = sshll.u32 %s2965_s29, 6  ;;  %s2805_s29 = scalar_lea.vmem %s2804_s3, 128 }
 0xec3   : > { %v2621_v13 = vpop.f32.mrf.mxu0  ;;  %s2238_s1 = scalar_lea.hbm %s3413_s13, %s2390_s23 }
 0xec5   : > { %v1802_v16 = vpop.f32.mrf.mxu0 }
 0xec7   : > { %v2622_v17 = vpop.f32.mrf.mxu0 }
 0xec9   : > { %v1906_v18 = vpop.f32.mrf.mxu0 }
 0xeca   : > { %1913 = vrot.lane.b32.xlu1 %v1906_v18, %s3443_s30  ;;  %v2215_v18 = vld [vmem:[%s3409_s9] sm:$0x1]  ;;  %s431_s30 = scalar_lea.vmem [#allocation3], %s2303_s21 }
 0xecb   : > { %v2633_v20 = vpop.f32.mrf.mxu0  ;;  %s2240_s22 = sshll.u32 %s431_s30, 4  ;;  %s2241_s22 = int_to_ptr.vmem [resolvable:$true] %s2240_s22 }
 0xecc   : > { %v2217_v20 = vpack.i.b16 %v2215_v18, %v2215_v18  ;;  %s2799_s24 = scalar_lea.vmem %s2241_s22, 64  ;;  %p2806_p0 = scmp.lt.s32.totalorder %s2241_s22, %s2804_s3 }
 0xecd   : > { %v1909_v23 = vpop.f32.mrf.mxu0  ;;  %p2800_p11 = scmp.ne.s32.totalorder %s2241_s22, %s2799_s24  ;;  %p2807_p1 = scmp.lt.s32.totalorder %s2805_s29, %s2799_s24 }
 0xecf   : > { %v2634_v24 = vpop.f32.mrf.mxu0  ;;  %p2801_p12 = pnand %p2800_p11, %p2982_p5  ;;  %p2808_p2 = por %p2807_p1, %p2806_p0 }
 0xed1   : > { %p2802_p13 = pneg %p2801_p12 }
 0xed3   : > { %p2809_p3 = pnand %p2808_p2, %p2802_p13 }
 0xf2c   : > { %v1690_v25 = vpop.permute.xlu1 %1689 }
 0xf2d   : > { %1692 = vst.msk [vmem:[#allocation2] sm:$0xff] %vm826_vm6, %v1690_v25  ;;  %v2222_v25 = vrot.slane %v2217_v20, %v3022_v14 }
 0xf34   : > { %v1807_v26 = vpop.permute.xlu0 %1806 }
 0xf35   : > { %1809 = vst.msk [vmem:[#allocation2] sm:$0xff] %vm944_vm7, %v1807_v26 }
 0xf3c   : > { %v1914_v27 = vpop.permute.xlu1 %1913 }
 0xf3d   : > { %1916 = vst.msk [vmem:[#allocation2] sm:$0xff] %vm1052_vm8, %v1914_v27 }
 0xf44   : > { %v1917_v28 = vld [vmem:[#allocation2] sm:$0xff] }
 0xf45   : > { %v1918_v30 = vpack.c.bf16 %v1917_v28, %v1917_v28 }
 0xf47   : > { %2640 = vmatmul.mubr.msk.bf16.vlgmr.msra.gmra.mxu1 %vm454_vm0, %v1918_v30 }
 0xf48   : > { %2655 = vmatprep.mubr.msk.bf16.mxu1 %vm2862_vm1, %v2861_v5  ;;  %2652 = vmatpush3.bf16.msra.mxu1 %v2742_v41 }
 0xf49   : > { %2653 = vmatprep.subr.bf16.mxu1 %v2861_v5 }
 0xf4c   : > { %2654 = vmatpush3.bf16.msra.mxu1 %v2744_v42 }
0x1007   : > { %v1973_v31 = vpop.f32.mrf.mxu1 }
0x1008   : > { %v1979_v34 = vpack.c.bf16 %v1973_v31, %v1973_v31 }
0x1009   : > { %v2641_v35 = vpop.f32.mrf.mxu1 }
0x100a   : > { %v3317_v36 = vadd.bf16 %v1979_v34, %v3203_v15  ;;  %v2743_v15 = vld [vmem:[%s3406_s6 + $0x10] sm:$0xff]  }
0x100b   : > { %v1976_v37 = vpop.f32.mrf.mxu1  ;;  %2646 = vmatpush3.bf16.msra.mxu0 %v2743_v15 }
0x100c   : > { %v1981_v38 = vunpack.c.l.bf16 %v3317_v36  ;;  %2659 = vmatprep.subr.bf16.mxu0 %v2861_v5 }
0x100d   : > { %v2642_v39 = vpop.f32.mrf.mxu1 }
0x100e   : > { %v1982_v40 = vmul.f32 %v1981_v38, %v1981_v38 }
0x1010   : > { %v1983_v19 = vsel %vm454_vm0, %v1982_v40, 0.0 }
0x1011   : > { %1984 = vadd.xlane.f32.xlu0 %v1983_v19 }
0x109a   : > { %v1985_v0 = vpop.xlane.xlu0 %1984 }
0x109b   : > { %v1986_v44 = vmul.f32 0.03125, %v1985_v0 }
0x109d   : > { %v1987_v21 = vadd.f32 1e-06, %v1986_v44 }
0x109f   : > { %2791 = vrsqrt.f32 %v1987_v21 }
0x10ac   : > { %v2792_v46 = vpop.eup %2791 }
0x10ad   : > { %v1989_v47 = vmul.f32 %v2792_v46, %v1981_v38 }
0x10af   : > { %v1990_v49 = vpack.c.bf16 %v1989_v47, %v1989_v47 }
0x10b1   : > { %v2000_v50 = vmul.bf16 %v1999_v48, %v1990_v49 }
0x10b3   : > { %2648 = vmatmul.mubr.msk.bf16.vlgmr.msra.gmra.mxu0 %vm454_vm0, %v2000_v50  ;;  %2656 = vmatmul.mubr.msk.bf16.vlgmr.msra.gmra.mxu1 %vm454_vm0, %v2000_v50 }
0x10b4   : > { %2667 = vmatprep.mubr.msk.bf16.mxu0 %vm2862_vm1, %v2861_v5  ;;  %2660 = vmatpush3.bf16.msra.mxu0 %v2745_v52 }
0x10b5   : > { %2661 = vmatprep.subr.bf16.mxu0 %v2861_v5 }
0x10b8   : > { %2662 = vmatpush3.bf16.msra.mxu0 %v2746_v53 }
0x10b9   : > { %2663 = vmatprep.subr.bf16.mxu0 %v2861_v5 }
0x10bc   : > { %2664 = vmatpush3.bf16.msra.mxu0 %v2747_v54 }
0x10bd   : > { %2665 = vmatprep.subr.bf16.mxu0 %v2861_v5 }
0x10c0   : > { %2666 = vmatpush3.bf16.msra.mxu0 %v2748_v32 }
0x1173   : > { %v2055_v33 = vpop.f32.mrf.mxu0  ;;  %v2112_v29 = vpop.f32.mrf.mxu1 }
0x1174   : > { %v2375_v43 = vmul.f32 -1.442695, %v2055_v33 }
0x1175   : > { %v2649_v55 = vpop.f32.mrf.mxu0  ;;  %v2657_v56 = vpop.f32.mrf.mxu1 }
0x1176   : > { %2793 = vpow2.f32 %v2375_v43 }
0x1177   : > { %v2058_v57 = vpop.f32.mrf.mxu0  ;;  %v2115_v58 = vpop.f32.mrf.mxu1 }
0x1179   : > { %v2650_v59 = vpop.f32.mrf.mxu0  ;;  %v2658_v60 = vpop.f32.mrf.mxu1 }
0x1183   : > { %v2794_v61 = vpop.eup %2793 }
0x1184   : > { %v2121_v62 = vadd.f32 1.0, %v2794_v61 }
0x1186   : > { %2795 = vrcp.f32 %v2121_v62 }
0x1193   : > { %v2796_v63 = vpop.eup %2795 }
0x1194   : > { %v2124_v5 = vmul.f32 %v2796_v63, %v2055_v33 }
0x1196   : > { %v2125_v1 = vmul.f32 %v2124_v5, %v2112_v29 }
0x1198   : > { %v2126_v2 = vpack.c.bf16 %v2125_v1, %v2125_v1 }
0x119a   : > { %2668 = vmatmul.mubr.msk.bf16.vlgmr.msra.gmra.mxu0 %vm1292_vm9, %v2126_v2 }
0x125a   : > { %v2197_v3 = vpop.f32.mrf.mxu0 }
0x125b   : > { %v2203_v4 = vpack.c.bf16 %v2197_v3, %v2197_v3 }
0x125c   : > { %v2669_v6 = vpop.f32.mrf.mxu0 }
0x125d   : > { %v2204_v7 = vadd.bf16 %v2203_v4, %v3317_v36 }
0x125e   : > { %v2200_v8 = vpop.f32.mrf.mxu0 }
0x125f   : > { %v2205_v9 = vunpack.c.l.bf16 %v2204_v7 }
0x1260   : > { %v2670_v10 = vpop.f32.mrf.mxu0 }
0x1261   : > { %v2206_v11 = vmul.f32 %v2205_v9, %v2205_v9 }
0x1263   : > { %v2207_v12 = vsel %vm454_vm0, %v2206_v11, 0.0 }
0x1264   : > { %2208 = vadd.xlane.f32.xlu1 %v2207_v12 }
0x12ed   : > { %v2209_v13 = vpop.xlane.xlu1 %2208 }
0x12ee   : > { %v2210_v16 = vmul.f32 0.03125, %v2209_v13 }
0x12f0   : > { %v2211_v17 = vadd.f32 1e-06, %v2210_v16 }
0x12f2   : > { %2797 = vrsqrt.f32 %v2211_v17 }
0x12ff   : > { %v2798_v23 = vpop.eup %2797 }
0x1300   : > { %v2213_v24 = vmul.f32 %v2798_v23, %v2205_v9 }
0x1302   : > { %v2214_v26 = vpack.c.bf16 %v2213_v24, %v2213_v24 }
0x1304   : > { %v2223_v27 = vmul.bf16 %v2222_v25, %v2214_v26 }
0x1306   : > { %2225 = vst.msk [vmem:[%s431_s30] sm:$0xf] %vm2224_vm10, %v2223_v27 }
0x1307   : > { %2812 = shalt.err (!%p2809_p3)
}
0x1308   : > { %s2813_s21 = scalar_lea.hbm %s2238_s1, 64  ;;  %s2817_s23 = scalar_lea.hbm %s3413_s13, 128 }
0x1309   : > { %p2814_p4 = scmp.ne.s32.totalorder %s2238_s1, %s2813_s21  ;;  %p2818_p9 = scmp.lt.s32.totalorder %s2238_s1, %s3413_s13 }
0x130a   : > { %p2819_p10 = scmp.lt.s32.totalorder %s2817_s23, %s2813_s21 }
0x130b   : > { %p2815_p7 = pnand %p2814_p4, %p2982_p5 }
0x130c   : > { %p2820_p11 = por %p2819_p10, %p2818_p9 }
0x130d   : > { %p2816_p8 = pneg %p2815_p7 }
0x130f   : > { %p2821_p12 = pnand %p2820_p11, %p2816_p8 }
0x1311   : > { %2824 = shalt.err (!%p2821_p12)
}
0x1312   : > { %2671 = dma.vmem_to_hbm [thread:$0]  (%p2982_p5), %s2241_s22, 64, %s2238_s1, %s2227_s20  }
0x1313 PF: > { %p2677_p13 = scmp.ge.s32.totalorder %s2859_s28, 2  ;;  %s2252_s2 = sand.u32 1, %s2847_s25  }
0x1314   : > { %s2253_s3 = scalar_lea.sflag [#allocation4], %s2252_s2 }
0x1315   : > { %p2674_p0 = pnand %p2677_p13, %p2986_p6 }
0x1317   : > { %p2675_p1 = pneg %p2674_p0 }
0x1319   : > { %2842 = dma.done.wait (%p2675_p1), %s2253_s3, 64  }
0x131a   : > { %2844 = vsyncadd (%p2675_p1), %s2253_s3, 4294967232  ;;  %p23_p2 = scmp.ge.s32.totalorder %s2969_s14, 4   ;;  %s3444_s25 = smov %s2851_s26 }
0x131b   : > { %s3445_s26 = smov %s2855_s27  ;;  %s3446_s27 = smov %s2980_s17 }
0x131c   : > { %s3447_s28 = smov %s2969_s14  ;;  %25 = sbr.rel (!%p23_p2) target bundleno = 8 (0x8), region = 115 }
0x1321   :  { %2258 = vsyncpa [#allocation4], 1 }
0x1322   :  { %2260 = vsyncpa [#allocation4 + $0x1], 1 }

</bundles_post_ra>
